<compile_context>
chip_gen: v7x
topology: tpu7x:2x2x1
jax: 0.10.0
libtpu: 0.0.40
codegen_flags: <defaults>
</compile_context>

<pallas_src>
import functools

import numpy as np

import jax
import jax.numpy as jnp
from jax.experimental import pallas as pl
from jax.experimental.pallas import tpu as pltpu


# ------------------------- fixed geometry of the config -------------------------
LANE = 128          # lane-padded width of the dense stages / output
IN_CH = 4           # input channels
C1 = 8              # conv1 out channels
C2 = 16             # conv2 out channels
SPATIAL = 16        # input spatial (16x16)
H1 = 8              # conv1 output spatial (8x8)
H2 = 4              # conv2 output spatial (4x4)
P2 = H2 * H2        # 16 conv2 output positions
K = 3               # kernel size
T = K * K           # 9 taps per conv
KCOLS = T * IN_CH + 1   # 36 conv1-patch values + 1 validity/bias indicator
ROWS = T * P2       # 144 (t2, po2) rows per batch element


def _build_im2col_indices():
    """Static gather indices for the fused conv1+conv2 im2col (built once in numpy)."""
    ih = np.zeros((ROWS, T * IN_CH), np.int32)
    iw = np.zeros((ROWS, T * IN_CH), np.int32)
    ic = np.zeros((T * IN_CH,), np.int32)
    valid = np.zeros((ROWS,), np.float32)
    for kh1 in range(K):
        for kw1 in range(K):
            for ci in range(IN_CH):
                ic[(kh1 * K + kw1) * IN_CH + ci] = ci
    for kh2 in range(K):
        for kw2 in range(K):
            t2 = kh2 * K + kw2
            for ho2 in range(H2):
                for wo2 in range(H2):
                    r = t2 * P2 + ho2 * H2 + wo2
                    h1r = 2 * ho2 + kh2 - 1          # h1 position conv2 tap t2 reads
                    h1c = 2 * wo2 + kw2 - 1
                    ok = (0 <= h1r < H1) and (0 <= h1c < H1)
                    valid[r] = 1.0 if ok else 0.0    # conv2 zero padding -> whole row 0
                    if not ok:
                        continue
                    for kh1 in range(K):
                        for kw1 in range(K):
                            for ci in range(IN_CH):
                                c = (kh1 * K + kw1) * IN_CH + ci
                                ih[r, c] = 2 * h1r + kh1   # coords in the 18x18 padded x
                                iw[r, c] = 2 * h1c + kw1
    return ih, iw, ic, valid


_IH, _IW, _IC, _VALID = _build_im2col_indices()


# ---------------------------------------------------------------------------
# Fused forward kernel: one batch tile (Bt elements) per grid step.
# Row ordering everywhere is (po2, b); batch ends up on the sublane/M axis.
# ---------------------------------------------------------------------------
def _qnet_fused_kernel(xcol_ref, w1_ref, w2_ref, b2_ref, wfc_ref, wq_ref, rb_ref,
                       out_ref):
    f32 = jnp.float32
    bt = out_ref.shape[0]                       # batch tile size
    w1 = w1_ref[...]                            # (37, C1)  conv1 weights + bias row

    # ---- conv1 (+bias via indicator column) + conv2, one tap of conv2 at a time ----
    acc2 = None
    for t2 in range(T):
        a_t = xcol_ref[t2]                      # (P2*bt, 37): conv1 patches for tap t2
        h1_t = jnp.maximum(
            jnp.dot(a_t, w1, preferred_element_type=f32), 0.0)       # (P2*bt, C1)
        c = jnp.dot(h1_t, w2_ref[t2], preferred_element_type=f32)    # (P2*bt, C2)
        acc2 = c if acc2 is None else acc2 + c
    h2 = jnp.maximum(acc2 + b2_ref[...], 0.0)   # (P2*bt, C2), rows ordered (po2, b)

    # ---- fc with the torch NCHW flatten folded into per-position weights ----
    hacc = None
    for p in range(P2):
        piece = h2[p * bt:(p + 1) * bt, :]      # (bt, C2) contiguous row slice
        c = jnp.dot(piece, wfc_ref[p], preferred_element_type=f32)   # (bt, 128)
        hacc = c if hacc is None else hacc + c
    rb = rb_ref[...]                            # (2, 128): fc bias / head bias
    h = jnp.maximum(hacc + rb[0:1, :], 0.0)     # (bt, 128)

    # ---- dueling head folded into one lane-dense dense layer ----
    out_ref[...] = jnp.dot(h, wq_ref[...], preferred_element_type=f32) + rb[1:2, :]


def _qnet_pallas(xcol, consts, bt, g):
    xspec = pl.BlockSpec((T, P2 * bt, KCOLS), lambda i: (0, i, 0))

    def cspec(arr):
        nd = arr.ndim
        return pl.BlockSpec(arr.shape, lambda i, _n=nd: (0,) * _n)

    return pl.pallas_call(
        _qnet_fused_kernel,
        out_shape=jax.ShapeDtypeStruct((g * bt, LANE), jnp.float32),
        grid=(g,),
        in_specs=[xspec] + [cspec(a) for a in consts],
        out_specs=pl.BlockSpec((bt, LANE), lambda i: (i, 0)),
        compiler_params=pltpu.CompilerParams(
            dimension_semantics=("parallel",)),
    )(xcol, *consts)


# ---------------------------------------------------------------------------
# One-time parameter packing (pure preprocessing of torch-layout weights)
# ---------------------------------------------------------------------------
def pack_params(params, actions, use_bf16=True):
    wdt = jnp.bfloat16 if use_bf16 else jnp.float32

    # conv1: rows (t1*Cin + ci), cols co, plus a bias row (activated by the
    # im2col indicator column; rows with indicator 0 give relu(0)=0 = conv2 padding).
    w1 = jnp.asarray(params["conv1_w"], jnp.float32)                  # (C1, Cin, 3, 3)
    b1 = jnp.asarray(params["conv1_b"], jnp.float32)
    w1m = jnp.transpose(w1, (2, 3, 1, 0)).reshape(T * IN_CH, C1)
    w1aug = jnp.concatenate([w1m, b1[None, :]], axis=0).astype(wdt)   # (37, C1)

    # conv2: one (C1, C2) matrix per tap, bias as a (1, C2) row.
    w2 = jnp.asarray(params["conv2_w"], jnp.float32)                  # (C2, C1, 3, 3)
    w2s = jnp.transpose(w2, (2, 3, 1, 0)).reshape(T, C1, C2)
    b2 = jnp.asarray(params["conv2_b"], jnp.float32)[None, :]         # (1, C2)

    # fc with the NCHW flatten folded in: wfc3[po2, co, :] = fc_w[co*16 + po2, :]
    fc_w = jnp.asarray(params["fc_w"], jnp.float32)                   # (256, 32)
    hid = fc_w.shape[1]
    wfc3 = fc_w.reshape(C2, P2, hid).transpose(1, 0, 2)               # (16, 16, 32)
    wfc3 = jnp.zeros((P2, C2, LANE), jnp.float32).at[:, :, :hid].set(wfc3)

    # dueling head folded into one dense layer:
    #   q = v + a - mean(a) = h @ Wq + bq,  Wq = v_w 1_A^T + a_w (I - 1/A)
    a_w = jnp.asarray(params["a_w"], jnp.float32)                     # (32, A)
    v_w = jnp.asarray(params["v_w"], jnp.float32)                     # (32, 1)
    cmat = (jnp.eye(actions, dtype=jnp.float32)
            - jnp.ones((actions, actions), jnp.float32) / actions)
    wq_small = v_w @ jnp.ones((1, actions), jnp.float32) + a_w @ cmat
    bq_small = (jnp.asarray(params["v_b"], jnp.float32) * jnp.ones((actions,), jnp.float32)
                + jnp.asarray(params["a_b"], jnp.float32) @ cmat)
    wq = jnp.zeros((LANE, LANE), jnp.float32).at[:hid, :actions].set(wq_small)

    rb = jnp.zeros((2, LANE), jnp.float32)
    rb = rb.at[0, :hid].set(jnp.asarray(params["fc_b"], jnp.float32))
    rb = rb.at[1, :actions].set(bq_small)

    return {"w1aug": w1aug, "w2s": w2s, "b2": b2, "wfc3": wfc3, "wq": wq, "rb": rb}


def _choose_bt(batch):
    """Batch tile: multiple of 8, capped at 128, grid >= 2 once batch >= 16 (v7x megacore)."""
    bt = 8 * ((batch + 15) // 16)
    return max(8, min(128, bt))


@functools.partial(jax.jit, static_argnames=("actions",))
def qnetwork_forward(packed, x_nchw, *, actions):
    B = x_nchw.shape[0]
    bt = _choose_bt(B)
    g = -(-B // bt)
    b_pad = g * bt

    # Fused conv1+conv2 im2col, built once with cheap XLA ops (pad + gather).
    x = x_nchw.astype(jnp.float32)
    xpad = jnp.pad(x, ((0, 0), (0, 0), (1, 1), (1, 1)))               # (B, 4, 18, 18)
    xcol = xpad[:, _IC, _IH, _IW]                                     # (B, 144, 36)
    xcol = xcol * _VALID[None, :, None]
    ind = jnp.broadcast_to(jnp.asarray(_VALID)[None, :, None], (B, ROWS, 1))
    xcol = jnp.concatenate([xcol, ind], axis=-1)                      # (B, 144, 37)
    xcol = xcol.astype(packed["w1aug"].dtype)
    if b_pad != B:
        xcol = jnp.pad(xcol, ((0, b_pad - B), (0, 0), (0, 0)))
    # -> (T, grid * P2 * Bt, 37), so each grid step reads rows ordered (t2, po2, b)
    xcol = (xcol.reshape(g, bt, T, P2, KCOLS)
                .transpose(2, 0, 3, 1, 4)
                .reshape(T, g * P2 * bt, KCOLS))

    consts = [packed["w1aug"], packed["w2s"], packed["b2"],
              packed["wfc3"], packed["wq"], packed["rb"]]
    q_pad = _qnet_pallas(xcol, consts, bt, g)                         # (b_pad, 128)
    return q_pad[:B, :actions]


# ---------------------------------------------------------------------------
# Deterministic parameter init + pure-JAX reference for validation
# ---------------------------------------------------------------------------
def init_params(key, in_ch=4, c1=8, c2=16, spatial=16, hidden=32, actions=5):
    ho2 = spatial // 4
    feat = c2 * ho2 * ho2
    ks = jax.random.split(key, 10)

    def u(k, shape, scale):
        return (jax.random.uniform(k, shape, jnp.float32) * 2.0 - 1.0) * scale

    return {
        "conv1_w": u(ks[0], (c1, in_ch, 3, 3), 0.2),   # PyTorch OIHW
        "conv1_b": u(ks[1], (c1,), 0.1),
        "conv2_w": u(ks[2], (c2, c1, 3, 3), 0.2),
        "conv2_b": u(ks[3], (c2,), 0.1),
        "fc_w": u(ks[4], (feat, hidden), 0.1),
        "fc_b": u(ks[5], (hidden,), 0.1),
        "v_w": u(ks[6], (hidden, 1), 0.2),
        "v_b": u(ks[7], (1,), 0.1),
        "a_w": u(ks[8], (hidden, actions), 0.2),
        "a_b": u(ks[9], (actions,), 0.1),
    }


def reference_forward(params, x_nchw):
    y = jax.lax.conv_general_dilated(
        x_nchw, params["conv1_w"], (2, 2), ((1, 1), (1, 1)),
        dimension_numbers=("NCHW", "OIHW", "NCHW"))
    y = jax.nn.relu(y + params["conv1_b"][None, :, None, None])
    y = jax.lax.conv_general_dilated(
        y, params["conv2_w"], (2, 2), ((1, 1), (1, 1)),
        dimension_numbers=("NCHW", "OIHW", "NCHW"))
    y = jax.nn.relu(y + params["conv2_b"][None, :, None, None])
    f = y.reshape(y.shape[0], -1)
    h = jax.nn.relu(f @ params["fc_w"] + params["fc_b"])
    v = h @ params["v_w"] + params["v_b"]
    a = h @ params["a_w"] + params["a_b"]
    return v + a - a.mean(axis=-1, keepdims=True)


if __name__ == "__main__":
    key = jax.random.PRNGKey(0)
    kx, kp, kx2 = jax.random.split(key, 3)
    params = init_params(kp)
    packed = pack_params(params, actions=5)          # bf16 operands for the big matmul
    tol = 2e-2                                       # bf16 input/weight quantisation

    # Small-batch check (batch=2, grid=1)
    x = jax.random.normal(kx, (2, 4, 16, 16), jnp.float32)   # NCHW, like PyTorch
    q = jax.block_until_ready(qnetwork_forward(packed, x, actions=5))
    q_ref = reference_forward(params, x)
    assert q.shape == (2, 5)
    assert jnp.allclose(q, q_ref, atol=tol, rtol=tol), (q, q_ref)

    # Larger-batch check exercising batch padding and grid > 1 (megacore path)
    x2 = jax.random.normal(kx2, (40, 4, 16, 16), jnp.float32)
    q2 = jax.block_until_ready(qnetwork_forward(packed, x2, actions=5))
    q2_ref = reference_forward(params, x2)
    assert q2.shape == (40, 5)
    assert jnp.allclose(q2, q2_ref, atol=tol, rtol=tol)

    print("KERNEL_OK")
</pallas_src>

<mosaic_0001>
module attributes {stable_mosaic.version = 11 : i64} {
  func.func @_qnet_fused_kernel(%arg0: i32, %arg1: memref<9x128x37xbf16, #tpu.memory_space<vmem>>, %arg2: memref<37x8xbf16, #tpu.memory_space<vmem>>, %arg3: memref<9x8x16xf32, #tpu.memory_space<vmem>>, %arg4: memref<1x16xf32, #tpu.memory_space<vmem>>, %arg5: memref<16x16x128xf32, #tpu.memory_space<vmem>>, %arg6: memref<128x128xf32, #tpu.memory_space<vmem>>, %arg7: memref<2x128xf32, #tpu.memory_space<vmem>>, %arg8: memref<8x128xf32, #tpu.memory_space<vmem>>) attributes {dimension_semantics = [#tpu.dimension_semantics<parallel>], iteration_bounds = array<i64: 1>, scalar_prefetch = 0 : i64, scratch_operands = 0 : i64, tpu.core_type = #tpu.core_type<tc>, window_params = [{transform_indices = @transform_0, window_bounds = array<i64: 9, 128, 37>}, {pipeline_mode = #tpu.pipeline_mode<synchronous>, transform_indices = @transform_1, window_bounds = array<i64: 37, 8>}, {pipeline_mode = #tpu.pipeline_mode<synchronous>, transform_indices = @transform_2, window_bounds = array<i64: 9, 8, 16>}, {pipeline_mode = #tpu.pipeline_mode<synchronous>, transform_indices = @transform_3, window_bounds = array<i64: 1, 16>}, {pipeline_mode = #tpu.pipeline_mode<synchronous>, transform_indices = @transform_4, window_bounds = array<i64: 16, 16, 128>}, {pipeline_mode = #tpu.pipeline_mode<synchronous>, transform_indices = @transform_5, window_bounds = array<i64: 128, 128>}, {pipeline_mode = #tpu.pipeline_mode<synchronous>, transform_indices = @transform_6, window_bounds = array<i64: 2, 128>}, {transform_indices = @transform_7, window_bounds = array<i64: 8, 128>}]} {
    %c0 = arith.constant 0 : index
    %c0_0 = arith.constant 0 : index
    %0 = vector.load %arg2[%c0, %c0_0] : memref<37x8xbf16, #tpu.memory_space<vmem>>, vector<37x8xbf16>
    %c0_1 = arith.constant 0 : index
    %c0_2 = arith.constant 0 : index
    %c0_3 = arith.constant 0 : index
    %1 = vector.load %arg1[%c0_1, %c0_2, %c0_3] : memref<9x128x37xbf16, #tpu.memory_space<vmem>>, vector<1x128x37xbf16>
    %2 = vector.shape_cast %1 : vector<1x128x37xbf16> to vector<128x37xbf16>
    %cst = arith.constant dense<0.000000e+00> : vector<128x8xf32>
    %3 = tpu.matmul %2, %0, %cst {dimension_numbers = #tpu.dot_dimension_numbers<[1], [0], [0], [1], [0, 0, 1, 1], [], []>} : vector<128x37xbf16>, vector<37x8xbf16>, vector<128x8xf32> -> vector<128x8xf32>
    %cst_4 = arith.constant 0.000000e+00 : f32
    %4 = vector.broadcast %cst_4 : f32 to vector<128x8xf32>
    %5 = arith.maximumf %3, %4 : vector<128x8xf32>
    %c0_5 = arith.constant 0 : index
    %c0_6 = arith.constant 0 : index
    %c0_7 = arith.constant 0 : index
    %6 = vector.load %arg3[%c0_5, %c0_6, %c0_7] : memref<9x8x16xf32, #tpu.memory_space<vmem>>, vector<1x8x16xf32>
    %7 = vector.shape_cast %6 : vector<1x8x16xf32> to vector<8x16xf32>
    %cst_8 = arith.constant dense<0.000000e+00> : vector<128x16xf32>
    %8 = tpu.matmul %5, %7, %cst_8 {dimension_numbers = #tpu.dot_dimension_numbers<[1], [0], [0], [1], [0, 0, 1, 1], [], []>} : vector<128x8xf32>, vector<8x16xf32>, vector<128x16xf32> -> vector<128x16xf32>
    %c1 = arith.constant 1 : index
    %c0_9 = arith.constant 0 : index
    %c0_10 = arith.constant 0 : index
    %9 = vector.load %arg1[%c1, %c0_9, %c0_10] : memref<9x128x37xbf16, #tpu.memory_space<vmem>>, vector<1x128x37xbf16>
    %10 = vector.shape_cast %9 : vector<1x128x37xbf16> to vector<128x37xbf16>
    %cst_11 = arith.constant dense<0.000000e+00> : vector<128x8xf32>
    %11 = tpu.matmul %10, %0, %cst_11 {dimension_numbers = #tpu.dot_dimension_numbers<[1], [0], [0], [1], [0, 0, 1, 1], [], []>} : vector<128x37xbf16>, vector<37x8xbf16>, vector<128x8xf32> -> vector<128x8xf32>
    %cst_12 = arith.constant 0.000000e+00 : f32
    %12 = vector.broadcast %cst_12 : f32 to vector<128x8xf32>
    %13 = arith.maximumf %11, %12 : vector<128x8xf32>
    %c1_13 = arith.constant 1 : index
    %c0_14 = arith.constant 0 : index
    %c0_15 = arith.constant 0 : index
    %14 = vector.load %arg3[%c1_13, %c0_14, %c0_15] : memref<9x8x16xf32, #tpu.memory_space<vmem>>, vector<1x8x16xf32>
    %15 = vector.shape_cast %14 : vector<1x8x16xf32> to vector<8x16xf32>
    %cst_16 = arith.constant dense<0.000000e+00> : vector<128x16xf32>
    %16 = tpu.matmul %13, %15, %cst_16 {dimension_numbers = #tpu.dot_dimension_numbers<[1], [0], [0], [1], [0, 0, 1, 1], [], []>} : vector<128x8xf32>, vector<8x16xf32>, vector<128x16xf32> -> vector<128x16xf32>
    %17 = arith.addf %8, %16 : vector<128x16xf32>
    %c2 = arith.constant 2 : index
    %c0_17 = arith.constant 0 : index
    %c0_18 = arith.constant 0 : index
    %18 = vector.load %arg1[%c2, %c0_17, %c0_18] : memref<9x128x37xbf16, #tpu.memory_space<vmem>>, vector<1x128x37xbf16>
    %19 = vector.shape_cast %18 : vector<1x128x37xbf16> to vector<128x37xbf16>
    %cst_19 = arith.constant dense<0.000000e+00> : vector<128x8xf32>
    %20 = tpu.matmul %19, %0, %cst_19 {dimension_numbers = #tpu.dot_dimension_numbers<[1], [0], [0], [1], [0, 0, 1, 1], [], []>} : vector<128x37xbf16>, vector<37x8xbf16>, vector<128x8xf32> -> vector<128x8xf32>
    %cst_20 = arith.constant 0.000000e+00 : f32
    %21 = vector.broadcast %cst_20 : f32 to vector<128x8xf32>
    %22 = arith.maximumf %20, %21 : vector<128x8xf32>
    %c2_21 = arith.constant 2 : index
    %c0_22 = arith.constant 0 : index
    %c0_23 = arith.constant 0 : index
    %23 = vector.load %arg3[%c2_21, %c0_22, %c0_23] : memref<9x8x16xf32, #tpu.memory_space<vmem>>, vector<1x8x16xf32>
    %24 = vector.shape_cast %23 : vector<1x8x16xf32> to vector<8x16xf32>
    %cst_24 = arith.constant dense<0.000000e+00> : vector<128x16xf32>
    %25 = tpu.matmul %22, %24, %cst_24 {dimension_numbers = #tpu.dot_dimension_numbers<[1], [0], [0], [1], [0, 0, 1, 1], [], []>} : vector<128x8xf32>, vector<8x16xf32>, vector<128x16xf32> -> vector<128x16xf32>
    %26 = arith.addf %17, %25 : vector<128x16xf32>
    %c3 = arith.constant 3 : index
    %c0_25 = arith.constant 0 : index
    %c0_26 = arith.constant 0 : index
    %27 = vector.load %arg1[%c3, %c0_25, %c0_26] : memref<9x128x37xbf16, #tpu.memory_space<vmem>>, vector<1x128x37xbf16>
    %28 = vector.shape_cast %27 : vector<1x128x37xbf16> to vector<128x37xbf16>
    %cst_27 = arith.constant dense<0.000000e+00> : vector<128x8xf32>
    %29 = tpu.matmul %28, %0, %cst_27 {dimension_numbers = #tpu.dot_dimension_numbers<[1], [0], [0], [1], [0, 0, 1, 1], [], []>} : vector<128x37xbf16>, vector<37x8xbf16>, vector<128x8xf32> -> vector<128x8xf32>
    %cst_28 = arith.constant 0.000000e+00 : f32
    %30 = vector.broadcast %cst_28 : f32 to vector<128x8xf32>
    %31 = arith.maximumf %29, %30 : vector<128x8xf32>
    %c3_29 = arith.constant 3 : index
    %c0_30 = arith.constant 0 : index
    %c0_31 = arith.constant 0 : index
    %32 = vector.load %arg3[%c3_29, %c0_30, %c0_31] : memref<9x8x16xf32, #tpu.memory_space<vmem>>, vector<1x8x16xf32>
    %33 = vector.shape_cast %32 : vector<1x8x16xf32> to vector<8x16xf32>
    %cst_32 = arith.constant dense<0.000000e+00> : vector<128x16xf32>
    %34 = tpu.matmul %31, %33, %cst_32 {dimension_numbers = #tpu.dot_dimension_numbers<[1], [0], [0], [1], [0, 0, 1, 1], [], []>} : vector<128x8xf32>, vector<8x16xf32>, vector<128x16xf32> -> vector<128x16xf32>
    %35 = arith.addf %26, %34 : vector<128x16xf32>
    %c4 = arith.constant 4 : index
    %c0_33 = arith.constant 0 : index
    %c0_34 = arith.constant 0 : index
    %36 = vector.load %arg1[%c4, %c0_33, %c0_34] : memref<9x128x37xbf16, #tpu.memory_space<vmem>>, vector<1x128x37xbf16>
    %37 = vector.shape_cast %36 : vector<1x128x37xbf16> to vector<128x37xbf16>
    %cst_35 = arith.constant dense<0.000000e+00> : vector<128x8xf32>
    %38 = tpu.matmul %37, %0, %cst_35 {dimension_numbers = #tpu.dot_dimension_numbers<[1], [0], [0], [1], [0, 0, 1, 1], [], []>} : vector<128x37xbf16>, vector<37x8xbf16>, vector<128x8xf32> -> vector<128x8xf32>
    %cst_36 = arith.constant 0.000000e+00 : f32
    %39 = vector.broadcast %cst_36 : f32 to vector<128x8xf32>
    %40 = arith.maximumf %38, %39 : vector<128x8xf32>
    %c4_37 = arith.constant 4 : index
    %c0_38 = arith.constant 0 : index
    %c0_39 = arith.constant 0 : index
    %41 = vector.load %arg3[%c4_37, %c0_38, %c0_39] : memref<9x8x16xf32, #tpu.memory_space<vmem>>, vector<1x8x16xf32>
    %42 = vector.shape_cast %41 : vector<1x8x16xf32> to vector<8x16xf32>
    %cst_40 = arith.constant dense<0.000000e+00> : vector<128x16xf32>
    %43 = tpu.matmul %40, %42, %cst_40 {dimension_numbers = #tpu.dot_dimension_numbers<[1], [0], [0], [1], [0, 0, 1, 1], [], []>} : vector<128x8xf32>, vector<8x16xf32>, vector<128x16xf32> -> vector<128x16xf32>
    %44 = arith.addf %35, %43 : vector<128x16xf32>
    %c5 = arith.constant 5 : index
    %c0_41 = arith.constant 0 : index
    %c0_42 = arith.constant 0 : index
    %45 = vector.load %arg1[%c5, %c0_41, %c0_42] : memref<9x128x37xbf16, #tpu.memory_space<vmem>>, vector<1x128x37xbf16>
    %46 = vector.shape_cast %45 : vector<1x128x37xbf16> to vector<128x37xbf16>
    %cst_43 = arith.constant dense<0.000000e+00> : vector<128x8xf32>
    %47 = tpu.matmul %46, %0, %cst_43 {dimension_numbers = #tpu.dot_dimension_numbers<[1], [0], [0], [1], [0, 0, 1, 1], [], []>} : vector<128x37xbf16>, vector<37x8xbf16>, vector<128x8xf32> -> vector<128x8xf32>
    %cst_44 = arith.constant 0.000000e+00 : f32
    %48 = vector.broadcast %cst_44 : f32 to vector<128x8xf32>
    %49 = arith.maximumf %47, %48 : vector<128x8xf32>
    %c5_45 = arith.constant 5 : index
    %c0_46 = arith.constant 0 : index
    %c0_47 = arith.constant 0 : index
    %50 = vector.load %arg3[%c5_45, %c0_46, %c0_47] : memref<9x8x16xf32, #tpu.memory_space<vmem>>, vector<1x8x16xf32>
    %51 = vector.shape_cast %50 : vector<1x8x16xf32> to vector<8x16xf32>
    %cst_48 = arith.constant dense<0.000000e+00> : vector<128x16xf32>
    %52 = tpu.matmul %49, %51, %cst_48 {dimension_numbers = #tpu.dot_dimension_numbers<[1], [0], [0], [1], [0, 0, 1, 1], [], []>} : vector<128x8xf32>, vector<8x16xf32>, vector<128x16xf32> -> vector<128x16xf32>
    %53 = arith.addf %44, %52 : vector<128x16xf32>
    %c6 = arith.constant 6 : index
    %c0_49 = arith.constant 0 : index
    %c0_50 = arith.constant 0 : index
    %54 = vector.load %arg1[%c6, %c0_49, %c0_50] : memref<9x128x37xbf16, #tpu.memory_space<vmem>>, vector<1x128x37xbf16>
    %55 = vector.shape_cast %54 : vector<1x128x37xbf16> to vector<128x37xbf16>
    %cst_51 = arith.constant dense<0.000000e+00> : vector<128x8xf32>
    %56 = tpu.matmul %55, %0, %cst_51 {dimension_numbers = #tpu.dot_dimension_numbers<[1], [0], [0], [1], [0, 0, 1, 1], [], []>} : vector<128x37xbf16>, vector<37x8xbf16>, vector<128x8xf32> -> vector<128x8xf32>
    %cst_52 = arith.constant 0.000000e+00 : f32
    %57 = vector.broadcast %cst_52 : f32 to vector<128x8xf32>
    %58 = arith.maximumf %56, %57 : vector<128x8xf32>
    %c6_53 = arith.constant 6 : index
    %c0_54 = arith.constant 0 : index
    %c0_55 = arith.constant 0 : index
    %59 = vector.load %arg3[%c6_53, %c0_54, %c0_55] : memref<9x8x16xf32, #tpu.memory_space<vmem>>, vector<1x8x16xf32>
    %60 = vector.shape_cast %59 : vector<1x8x16xf32> to vector<8x16xf32>
    %cst_56 = arith.constant dense<0.000000e+00> : vector<128x16xf32>
    %61 = tpu.matmul %58, %60, %cst_56 {dimension_numbers = #tpu.dot_dimension_numbers<[1], [0], [0], [1], [0, 0, 1, 1], [], []>} : vector<128x8xf32>, vector<8x16xf32>, vector<128x16xf32> -> vector<128x16xf32>
    %62 = arith.addf %53, %61 : vector<128x16xf32>
    %c7 = arith.constant 7 : index
    %c0_57 = arith.constant 0 : index
    %c0_58 = arith.constant 0 : index
    %63 = vector.load %arg1[%c7, %c0_57, %c0_58] : memref<9x128x37xbf16, #tpu.memory_space<vmem>>, vector<1x128x37xbf16>
    %64 = vector.shape_cast %63 : vector<1x128x37xbf16> to vector<128x37xbf16>
    %cst_59 = arith.constant dense<0.000000e+00> : vector<128x8xf32>
    %65 = tpu.matmul %64, %0, %cst_59 {dimension_numbers = #tpu.dot_dimension_numbers<[1], [0], [0], [1], [0, 0, 1, 1], [], []>} : vector<128x37xbf16>, vector<37x8xbf16>, vector<128x8xf32> -> vector<128x8xf32>
    %cst_60 = arith.constant 0.000000e+00 : f32
    %66 = vector.broadcast %cst_60 : f32 to vector<128x8xf32>
    %67 = arith.maximumf %65, %66 : vector<128x8xf32>
    %c7_61 = arith.constant 7 : index
    %c0_62 = arith.constant 0 : index
    %c0_63 = arith.constant 0 : index
    %68 = vector.load %arg3[%c7_61, %c0_62, %c0_63] : memref<9x8x16xf32, #tpu.memory_space<vmem>>, vector<1x8x16xf32>
    %69 = vector.shape_cast %68 : vector<1x8x16xf32> to vector<8x16xf32>
    %cst_64 = arith.constant dense<0.000000e+00> : vector<128x16xf32>
    %70 = tpu.matmul %67, %69, %cst_64 {dimension_numbers = #tpu.dot_dimension_numbers<[1], [0], [0], [1], [0, 0, 1, 1], [], []>} : vector<128x8xf32>, vector<8x16xf32>, vector<128x16xf32> -> vector<128x16xf32>
    %71 = arith.addf %62, %70 : vector<128x16xf32>
    %c8 = arith.constant 8 : index
    %c0_65 = arith.constant 0 : index
    %c0_66 = arith.constant 0 : index
    %72 = vector.load %arg1[%c8, %c0_65, %c0_66] : memref<9x128x37xbf16, #tpu.memory_space<vmem>>, vector<1x128x37xbf16>
    %73 = vector.shape_cast %72 : vector<1x128x37xbf16> to vector<128x37xbf16>
    %cst_67 = arith.constant dense<0.000000e+00> : vector<128x8xf32>
    %74 = tpu.matmul %73, %0, %cst_67 {dimension_numbers = #tpu.dot_dimension_numbers<[1], [0], [0], [1], [0, 0, 1, 1], [], []>} : vector<128x37xbf16>, vector<37x8xbf16>, vector<128x8xf32> -> vector<128x8xf32>
    %cst_68 = arith.constant 0.000000e+00 : f32
    %75 = vector.broadcast %cst_68 : f32 to vector<128x8xf32>
    %76 = arith.maximumf %74, %75 : vector<128x8xf32>
    %c8_69 = arith.constant 8 : index
    %c0_70 = arith.constant 0 : index
    %c0_71 = arith.constant 0 : index
    %77 = vector.load %arg3[%c8_69, %c0_70, %c0_71] : memref<9x8x16xf32, #tpu.memory_space<vmem>>, vector<1x8x16xf32>
    %78 = vector.shape_cast %77 : vector<1x8x16xf32> to vector<8x16xf32>
    %cst_72 = arith.constant dense<0.000000e+00> : vector<128x16xf32>
    %79 = tpu.matmul %76, %78, %cst_72 {dimension_numbers = #tpu.dot_dimension_numbers<[1], [0], [0], [1], [0, 0, 1, 1], [], []>} : vector<128x8xf32>, vector<8x16xf32>, vector<128x16xf32> -> vector<128x16xf32>
    %80 = arith.addf %71, %79 : vector<128x16xf32>
    %c0_73 = arith.constant 0 : index
    %c0_74 = arith.constant 0 : index
    %81 = vector.load %arg4[%c0_73, %c0_74] : memref<1x16xf32, #tpu.memory_space<vmem>>, vector<1x16xf32>
    %82 = vector.broadcast %81 : vector<1x16xf32> to vector<128x16xf32>
    %83 = arith.addf %80, %82 : vector<128x16xf32>
    %cst_75 = arith.constant 0.000000e+00 : f32
    %84 = vector.broadcast %cst_75 : f32 to vector<128x16xf32>
    %85 = arith.maximumf %83, %84 : vector<128x16xf32>
    %86 = vector.extract_strided_slice %85 {offsets = [0, 0], sizes = [8, 16], strides = [1, 1]} : vector<128x16xf32> to vector<8x16xf32>
    %c0_76 = arith.constant 0 : index
    %c0_77 = arith.constant 0 : index
    %c0_78 = arith.constant 0 : index
    %87 = vector.load %arg5[%c0_76, %c0_77, %c0_78] : memref<16x16x128xf32, #tpu.memory_space<vmem>>, vector<1x16x128xf32>
    %88 = vector.shape_cast %87 : vector<1x16x128xf32> to vector<16x128xf32>
    %cst_79 = arith.constant dense<0.000000e+00> : vector<8x128xf32>
    %89 = tpu.matmul %86, %88, %cst_79 {dimension_numbers = #tpu.dot_dimension_numbers<[1], [0], [0], [1], [0, 0, 1, 1], [], []>} : vector<8x16xf32>, vector<16x128xf32>, vector<8x128xf32> -> vector<8x128xf32>
    %90 = vector.extract_strided_slice %85 {offsets = [8, 0], sizes = [8, 16], strides = [1, 1]} : vector<128x16xf32> to vector<8x16xf32>
    %c1_80 = arith.constant 1 : index
    %c0_81 = arith.constant 0 : index
    %c0_82 = arith.constant 0 : index
    %91 = vector.load %arg5[%c1_80, %c0_81, %c0_82] : memref<16x16x128xf32, #tpu.memory_space<vmem>>, vector<1x16x128xf32>
    %92 = vector.shape_cast %91 : vector<1x16x128xf32> to vector<16x128xf32>
    %cst_83 = arith.constant dense<0.000000e+00> : vector<8x128xf32>
    %93 = tpu.matmul %90, %92, %cst_83 {dimension_numbers = #tpu.dot_dimension_numbers<[1], [0], [0], [1], [0, 0, 1, 1], [], []>} : vector<8x16xf32>, vector<16x128xf32>, vector<8x128xf32> -> vector<8x128xf32>
    %94 = arith.addf %89, %93 : vector<8x128xf32>
    %95 = vector.extract_strided_slice %85 {offsets = [16, 0], sizes = [8, 16], strides = [1, 1]} : vector<128x16xf32> to vector<8x16xf32>
    %c2_84 = arith.constant 2 : index
    %c0_85 = arith.constant 0 : index
    %c0_86 = arith.constant 0 : index
    %96 = vector.load %arg5[%c2_84, %c0_85, %c0_86] : memref<16x16x128xf32, #tpu.memory_space<vmem>>, vector<1x16x128xf32>
    %97 = vector.shape_cast %96 : vector<1x16x128xf32> to vector<16x128xf32>
    %cst_87 = arith.constant dense<0.000000e+00> : vector<8x128xf32>
    %98 = tpu.matmul %95, %97, %cst_87 {dimension_numbers = #tpu.dot_dimension_numbers<[1], [0], [0], [1], [0, 0, 1, 1], [], []>} : vector<8x16xf32>, vector<16x128xf32>, vector<8x128xf32> -> vector<8x128xf32>
    %99 = arith.addf %94, %98 : vector<8x128xf32>
    %100 = vector.extract_strided_slice %85 {offsets = [24, 0], sizes = [8, 16], strides = [1, 1]} : vector<128x16xf32> to vector<8x16xf32>
    %c3_88 = arith.constant 3 : index
    %c0_89 = arith.constant 0 : index
    %c0_90 = arith.constant 0 : index
    %101 = vector.load %arg5[%c3_88, %c0_89, %c0_90] : memref<16x16x128xf32, #tpu.memory_space<vmem>>, vector<1x16x128xf32>
    %102 = vector.shape_cast %101 : vector<1x16x128xf32> to vector<16x128xf32>
    %cst_91 = arith.constant dense<0.000000e+00> : vector<8x128xf32>
    %103 = tpu.matmul %100, %102, %cst_91 {dimension_numbers = #tpu.dot_dimension_numbers<[1], [0], [0], [1], [0, 0, 1, 1], [], []>} : vector<8x16xf32>, vector<16x128xf32>, vector<8x128xf32> -> vector<8x128xf32>
    %104 = arith.addf %99, %103 : vector<8x128xf32>
    %105 = vector.extract_strided_slice %85 {offsets = [32, 0], sizes = [8, 16], strides = [1, 1]} : vector<128x16xf32> to vector<8x16xf32>
    %c4_92 = arith.constant 4 : index
    %c0_93 = arith.constant 0 : index
    %c0_94 = arith.constant 0 : index
    %106 = vector.load %arg5[%c4_92, %c0_93, %c0_94] : memref<16x16x128xf32, #tpu.memory_space<vmem>>, vector<1x16x128xf32>
    %107 = vector.shape_cast %106 : vector<1x16x128xf32> to vector<16x128xf32>
    %cst_95 = arith.constant dense<0.000000e+00> : vector<8x128xf32>
    %108 = tpu.matmul %105, %107, %cst_95 {dimension_numbers = #tpu.dot_dimension_numbers<[1], [0], [0], [1], [0, 0, 1, 1], [], []>} : vector<8x16xf32>, vector<16x128xf32>, vector<8x128xf32> -> vector<8x128xf32>
    %109 = arith.addf %104, %108 : vector<8x128xf32>
    %110 = vector.extract_strided_slice %85 {offsets = [40, 0], sizes = [8, 16], strides = [1, 1]} : vector<128x16xf32> to vector<8x16xf32>
    %c5_96 = arith.constant 5 : index
    %c0_97 = arith.constant 0 : index
    %c0_98 = arith.constant 0 : index
    %111 = vector.load %arg5[%c5_96, %c0_97, %c0_98] : memref<16x16x128xf32, #tpu.memory_space<vmem>>, vector<1x16x128xf32>
    %112 = vector.shape_cast %111 : vector<1x16x128xf32> to vector<16x128xf32>
    %cst_99 = arith.constant dense<0.000000e+00> : vector<8x128xf32>
    %113 = tpu.matmul %110, %112, %cst_99 {dimension_numbers = #tpu.dot_dimension_numbers<[1], [0], [0], [1], [0, 0, 1, 1], [], []>} : vector<8x16xf32>, vector<16x128xf32>, vector<8x128xf32> -> vector<8x128xf32>
    %114 = arith.addf %109, %113 : vector<8x128xf32>
    %115 = vector.extract_strided_slice %85 {offsets = [48, 0], sizes = [8, 16], strides = [1, 1]} : vector<128x16xf32> to vector<8x16xf32>
    %c6_100 = arith.constant 6 : index
    %c0_101 = arith.constant 0 : index
    %c0_102 = arith.constant 0 : index
    %116 = vector.load %arg5[%c6_100, %c0_101, %c0_102] : memref<16x16x128xf32, #tpu.memory_space<vmem>>, vector<1x16x128xf32>
    %117 = vector.shape_cast %116 : vector<1x16x128xf32> to vector<16x128xf32>
    %cst_103 = arith.constant dense<0.000000e+00> : vector<8x128xf32>
    %118 = tpu.matmul %115, %117, %cst_103 {dimension_numbers = #tpu.dot_dimension_numbers<[1], [0], [0], [1], [0, 0, 1, 1], [], []>} : vector<8x16xf32>, vector<16x128xf32>, vector<8x128xf32> -> vector<8x128xf32>
    %119 = arith.addf %114, %118 : vector<8x128xf32>
    %120 = vector.extract_strided_slice %85 {offsets = [56, 0], sizes = [8, 16], strides = [1, 1]} : vector<128x16xf32> to vector<8x16xf32>
    %c7_104 = arith.constant 7 : index
    %c0_105 = arith.constant 0 : index
    %c0_106 = arith.constant 0 : index
    %121 = vector.load %arg5[%c7_104, %c0_105, %c0_106] : memref<16x16x128xf32, #tpu.memory_space<vmem>>, vector<1x16x128xf32>
    %122 = vector.shape_cast %121 : vector<1x16x128xf32> to vector<16x128xf32>
    %cst_107 = arith.constant dense<0.000000e+00> : vector<8x128xf32>
    %123 = tpu.matmul %120, %122, %cst_107 {dimension_numbers = #tpu.dot_dimension_numbers<[1], [0], [0], [1], [0, 0, 1, 1], [], []>} : vector<8x16xf32>, vector<16x128xf32>, vector<8x128xf32> -> vector<8x128xf32>
    %124 = arith.addf %119, %123 : vector<8x128xf32>
    %125 = vector.extract_strided_slice %85 {offsets = [64, 0], sizes = [8, 16], strides = [1, 1]} : vector<128x16xf32> to vector<8x16xf32>
    %c8_108 = arith.constant 8 : index
    %c0_109 = arith.constant 0 : index
    %c0_110 = arith.constant 0 : index
    %126 = vector.load %arg5[%c8_108, %c0_109, %c0_110] : memref<16x16x128xf32, #tpu.memory_space<vmem>>, vector<1x16x128xf32>
    %127 = vector.shape_cast %126 : vector<1x16x128xf32> to vector<16x128xf32>
    %cst_111 = arith.constant dense<0.000000e+00> : vector<8x128xf32>
    %128 = tpu.matmul %125, %127, %cst_111 {dimension_numbers = #tpu.dot_dimension_numbers<[1], [0], [0], [1], [0, 0, 1, 1], [], []>} : vector<8x16xf32>, vector<16x128xf32>, vector<8x128xf32> -> vector<8x128xf32>
    %129 = arith.addf %124, %128 : vector<8x128xf32>
    %130 = vector.extract_strided_slice %85 {offsets = [72, 0], sizes = [8, 16], strides = [1, 1]} : vector<128x16xf32> to vector<8x16xf32>
    %c9 = arith.constant 9 : index
    %c0_112 = arith.constant 0 : index
    %c0_113 = arith.constant 0 : index
    %131 = vector.load %arg5[%c9, %c0_112, %c0_113] : memref<16x16x128xf32, #tpu.memory_space<vmem>>, vector<1x16x128xf32>
    %132 = vector.shape_cast %131 : vector<1x16x128xf32> to vector<16x128xf32>
    %cst_114 = arith.constant dense<0.000000e+00> : vector<8x128xf32>
    %133 = tpu.matmul %130, %132, %cst_114 {dimension_numbers = #tpu.dot_dimension_numbers<[1], [0], [0], [1], [0, 0, 1, 1], [], []>} : vector<8x16xf32>, vector<16x128xf32>, vector<8x128xf32> -> vector<8x128xf32>
    %134 = arith.addf %129, %133 : vector<8x128xf32>
    %135 = vector.extract_strided_slice %85 {offsets = [80, 0], sizes = [8, 16], strides = [1, 1]} : vector<128x16xf32> to vector<8x16xf32>
    %c10 = arith.constant 10 : index
    %c0_115 = arith.constant 0 : index
    %c0_116 = arith.constant 0 : index
    %136 = vector.load %arg5[%c10, %c0_115, %c0_116] : memref<16x16x128xf32, #tpu.memory_space<vmem>>, vector<1x16x128xf32>
    %137 = vector.shape_cast %136 : vector<1x16x128xf32> to vector<16x128xf32>
    %cst_117 = arith.constant dense<0.000000e+00> : vector<8x128xf32>
    %138 = tpu.matmul %135, %137, %cst_117 {dimension_numbers = #tpu.dot_dimension_numbers<[1], [0], [0], [1], [0, 0, 1, 1], [], []>} : vector<8x16xf32>, vector<16x128xf32>, vector<8x128xf32> -> vector<8x128xf32>
    %139 = arith.addf %134, %138 : vector<8x128xf32>
    %140 = vector.extract_strided_slice %85 {offsets = [88, 0], sizes = [8, 16], strides = [1, 1]} : vector<128x16xf32> to vector<8x16xf32>
    %c11 = arith.constant 11 : index
    %c0_118 = arith.constant 0 : index
    %c0_119 = arith.constant 0 : index
    %141 = vector.load %arg5[%c11, %c0_118, %c0_119] : memref<16x16x128xf32, #tpu.memory_space<vmem>>, vector<1x16x128xf32>
    %142 = vector.shape_cast %141 : vector<1x16x128xf32> to vector<16x128xf32>
    %cst_120 = arith.constant dense<0.000000e+00> : vector<8x128xf32>
    %143 = tpu.matmul %140, %142, %cst_120 {dimension_numbers = #tpu.dot_dimension_numbers<[1], [0], [0], [1], [0, 0, 1, 1], [], []>} : vector<8x16xf32>, vector<16x128xf32>, vector<8x128xf32> -> vector<8x128xf32>
    %144 = arith.addf %139, %143 : vector<8x128xf32>
    %145 = vector.extract_strided_slice %85 {offsets = [96, 0], sizes = [8, 16], strides = [1, 1]} : vector<128x16xf32> to vector<8x16xf32>
    %c12 = arith.constant 12 : index
    %c0_121 = arith.constant 0 : index
    %c0_122 = arith.constant 0 : index
    %146 = vector.load %arg5[%c12, %c0_121, %c0_122] : memref<16x16x128xf32, #tpu.memory_space<vmem>>, vector<1x16x128xf32>
    %147 = vector.shape_cast %146 : vector<1x16x128xf32> to vector<16x128xf32>
    %cst_123 = arith.constant dense<0.000000e+00> : vector<8x128xf32>
    %148 = tpu.matmul %145, %147, %cst_123 {dimension_numbers = #tpu.dot_dimension_numbers<[1], [0], [0], [1], [0, 0, 1, 1], [], []>} : vector<8x16xf32>, vector<16x128xf32>, vector<8x128xf32> -> vector<8x128xf32>
    %149 = arith.addf %144, %148 : vector<8x128xf32>
    %150 = vector.extract_strided_slice %85 {offsets = [104, 0], sizes = [8, 16], strides = [1, 1]} : vector<128x16xf32> to vector<8x16xf32>
    %c13 = arith.constant 13 : index
    %c0_124 = arith.constant 0 : index
    %c0_125 = arith.constant 0 : index
    %151 = vector.load %arg5[%c13, %c0_124, %c0_125] : memref<16x16x128xf32, #tpu.memory_space<vmem>>, vector<1x16x128xf32>
    %152 = vector.shape_cast %151 : vector<1x16x128xf32> to vector<16x128xf32>
    %cst_126 = arith.constant dense<0.000000e+00> : vector<8x128xf32>
    %153 = tpu.matmul %150, %152, %cst_126 {dimension_numbers = #tpu.dot_dimension_numbers<[1], [0], [0], [1], [0, 0, 1, 1], [], []>} : vector<8x16xf32>, vector<16x128xf32>, vector<8x128xf32> -> vector<8x128xf32>
    %154 = arith.addf %149, %153 : vector<8x128xf32>
    %155 = vector.extract_strided_slice %85 {offsets = [112, 0], sizes = [8, 16], strides = [1, 1]} : vector<128x16xf32> to vector<8x16xf32>
    %c14 = arith.constant 14 : index
    %c0_127 = arith.constant 0 : index
    %c0_128 = arith.constant 0 : index
    %156 = vector.load %arg5[%c14, %c0_127, %c0_128] : memref<16x16x128xf32, #tpu.memory_space<vmem>>, vector<1x16x128xf32>
    %157 = vector.shape_cast %156 : vector<1x16x128xf32> to vector<16x128xf32>
    %cst_129 = arith.constant dense<0.000000e+00> : vector<8x128xf32>
    %158 = tpu.matmul %155, %157, %cst_129 {dimension_numbers = #tpu.dot_dimension_numbers<[1], [0], [0], [1], [0, 0, 1, 1], [], []>} : vector<8x16xf32>, vector<16x128xf32>, vector<8x128xf32> -> vector<8x128xf32>
    %159 = arith.addf %154, %158 : vector<8x128xf32>
    %160 = vector.extract_strided_slice %85 {offsets = [120, 0], sizes = [8, 16], strides = [1, 1]} : vector<128x16xf32> to vector<8x16xf32>
    %c15 = arith.constant 15 : index
    %c0_130 = arith.constant 0 : index
    %c0_131 = arith.constant 0 : index
    %161 = vector.load %arg5[%c15, %c0_130, %c0_131] : memref<16x16x128xf32, #tpu.memory_space<vmem>>, vector<1x16x128xf32>
    %162 = vector.shape_cast %161 : vector<1x16x128xf32> to vector<16x128xf32>
    %cst_132 = arith.constant dense<0.000000e+00> : vector<8x128xf32>
    %163 = tpu.matmul %160, %162, %cst_132 {dimension_numbers = #tpu.dot_dimension_numbers<[1], [0], [0], [1], [0, 0, 1, 1], [], []>} : vector<8x16xf32>, vector<16x128xf32>, vector<8x128xf32> -> vector<8x128xf32>
    %164 = arith.addf %159, %163 : vector<8x128xf32>
    %c0_133 = arith.constant 0 : index
    %c0_134 = arith.constant 0 : index
    %165 = vector.load %arg7[%c0_133, %c0_134] : memref<2x128xf32, #tpu.memory_space<vmem>>, vector<2x128xf32>
    %166 = vector.extract_strided_slice %165 {offsets = [0, 0], sizes = [1, 128], strides = [1, 1]} : vector<2x128xf32> to vector<1x128xf32>
    %167 = vector.broadcast %166 : vector<1x128xf32> to vector<8x128xf32>
    %168 = arith.addf %164, %167 : vector<8x128xf32>
    %cst_135 = arith.constant 0.000000e+00 : f32
    %169 = vector.broadcast %cst_135 : f32 to vector<8x128xf32>
    %170 = arith.maximumf %168, %169 : vector<8x128xf32>
    %c0_136 = arith.constant 0 : index
    %c0_137 = arith.constant 0 : index
    %171 = vector.load %arg6[%c0_136, %c0_137] : memref<128x128xf32, #tpu.memory_space<vmem>>, vector<128x128xf32>
    %cst_138 = arith.constant dense<0.000000e+00> : vector<8x128xf32>
    %172 = tpu.matmul %170, %171, %cst_138 {dimension_numbers = #tpu.dot_dimension_numbers<[1], [0], [0], [1], [0, 0, 1, 1], [], []>} : vector<8x128xf32>, vector<128x128xf32>, vector<8x128xf32> -> vector<8x128xf32>
    %173 = vector.extract_strided_slice %165 {offsets = [1, 0], sizes = [1, 128], strides = [1, 1]} : vector<2x128xf32> to vector<1x128xf32>
    %174 = vector.broadcast %173 : vector<1x128xf32> to vector<8x128xf32>
    %175 = arith.addf %172, %174 : vector<8x128xf32>
    %c0_139 = arith.constant 0 : index
    %c0_140 = arith.constant 0 : index
    %176 = vector.load %arg8[%c0_139, %c0_140] : memref<8x128xf32, #tpu.memory_space<vmem>>, vector<8x128xf32>
    tpu.vector_store %arg8[%c0_139, %c0_140], %175 {strides = array<i32>} : memref<8x128xf32, #tpu.memory_space<vmem>>, vector<8x128xf32>,
    return
  }
  func.func @transform_0(%arg0: i32) -> (i32, i32, i32) {
    %c0_i32 = arith.constant 0 : i32
    %c0_i32_0 = arith.constant 0 : i32
    %c0_i32_1 = arith.constant 0 : i32
    return %c0_i32, %arg0, %c0_i32_0 : i32, i32, i32
  }
  func.func @transform_1(%arg0: i32) -> (i32, i32) {
    %c0_i32 = arith.constant 0 : i32
    %c0_i32_0 = arith.constant 0 : i32
    %c0_i32_1 = arith.constant 0 : i32
    return %c0_i32, %c0_i32_0 : i32, i32
  }
  func.func @transform_2(%arg0: i32) -> (i32, i32, i32) {
    %c0_i32 = arith.constant 0 : i32
    %c0_i32_0 = arith.constant 0 : i32
    %c0_i32_1 = arith.constant 0 : i32
    %c0_i32_2 = arith.constant 0 : i32
    return %c0_i32, %c0_i32_0, %c0_i32_1 : i32, i32, i32
  }
  func.func @transform_3(%arg0: i32) -> (i32, i32) {
    %c0_i32 = arith.constant 0 : i32
    %c0_i32_0 = arith.constant 0 : i32
    %c0_i32_1 = arith.constant 0 : i32
    return %c0_i32, %c0_i32_0 : i32, i32
  }
  func.func @transform_4(%arg0: i32) -> (i32, i32, i32) {
    %c0_i32 = arith.constant 0 : i32
    %c0_i32_0 = arith.constant 0 : i32
    %c0_i32_1 = arith.constant 0 : i32
    %c0_i32_2 = arith.constant 0 : i32
    return %c0_i32, %c0_i32_0, %c0_i32_1 : i32, i32, i32
  }
  func.func @transform_5(%arg0: i32) -> (i32, i32) {
    %c0_i32 = arith.constant 0 : i32
    %c0_i32_0 = arith.constant 0 : i32
    %c0_i32_1 = arith.constant 0 : i32
    return %c0_i32, %c0_i32_0 : i32, i32
  }
  func.func @transform_6(%arg0: i32) -> (i32, i32) {
    %c0_i32 = arith.constant 0 : i32
    %c0_i32_0 = arith.constant 0 : i32
    %c0_i32_1 = arith.constant 0 : i32
    return %c0_i32, %c0_i32_0 : i32, i32
  }
  func.func @transform_7(%arg0: i32) -> (i32, i32) {
    %c0_i32 = arith.constant 0 : i32
    %c0_i32_0 = arith.constant 0 : i32
    return %arg0, %c0_i32 : i32, i32
  }
}

</mosaic_0001>

<bundles_post_ra>
// kernel: qnetwork_forward.1
= control target key start
LH: loop header
LB: loop body
LE: loop exit
PB: predicated region body
PF: predicated region fallthrough
CT: control target
= control target key end

     0   :  { %vm128_vm0 = vcmask 1041408   ;;  %vm129_vm1 = vcmask 1042432   ;;  %vm103_vm2 = vcmask 302080   ;;  %v6687_v1 = vmov 65535   ;;  %s7686_s1 = inlined_call_operand.vmem [shape: bf16[37,8], index: 1, kind: input, shape index: {}]   ;;  %s7687_s0 = inlined_call_operand.vmem [shape: bf16[9,128,37], index: 0, kind: input, shape index: {}]   ;;  %s7688_s2 = inlined_call_operand.vmem [shape: f32[9,8,16], index: 2, kind: input, shape index: {}]   ;;  %s7689_s4 = inlined_call_operand.vmem [shape: f32[16,16,128], index: 4, kind: input, shape index: {}]   ;;  %s7690_s3 = inlined_call_operand.vmem [shape: f32[1,16], index: 3, kind: input, shape index: {}]   ;;  %s7691_s5 = inlined_call_operand.vmem [shape: f32[128,128], index: 5, kind: input, shape index: {}]   ;;  %s7692_s6 = inlined_call_operand.vmem [shape: f32[2,128], index: 6, kind: input, shape index: {}]   ;;  %s7693_s7 = inlined_call_operand.vmem [shape: f32[8,128], index: 7, kind: output, shape index: {}]  }
   0x1   :  { %v6734_v0 = vld [vmem:[%s7686_s1] sm:$0xff]   ;;  %v130_v2 = vsel %vm128_vm0, 4294967295, %v6687_v1  ;;  %v6739_v3 = vld [vmem:[%s7686_s1 + $0x8] sm:$0xff]   ;;  %v6614_v5 = vld [vmem:[%s7686_s1 + $0x10] ss:$0 sps:$4 sm:$0x77]  }
   0x2   :  { %v131_v4 = vsel %vm129_vm1, %v130_v2, 0  ;;  %5851 = vmatprep.subr.bf16.mxu1 %v6734_v0  ;;  %v6615_v6 = vld [vmem:[%s7687_s0 + $0x40] sm:$0xff]   ;;  %5829 = vmatprep.subr.bf16.mxu0 %v6734_v0  ;;  %v6616_v8 = vld [vmem:[%s7687_s0 + $0x48] sm:$0xff]   ;;  %v6617_v9 = vld [vmem:[%s7687_s0 + $0x50] sm:$0xff]   ;;  %vm445_vm3 = vcmask 64512   ;;  %vm6689_vm4 = vmmov 0  }
   0x3   :  { %5852 = vmatpush3.bf16.msra.mxu1 %v6734_v0  ;;  %5830 = vmatpush3.bf16.msra.mxu0 %v6734_v0  ;;  %v6752_v7 = vand.u32 %v6614_v5, %v131_v4  ;;  %v6623_v10 = vld [vmem:[%s7687_s0] sm:$0xff]   ;;  %v6624_v11 = vld [vmem:[%s7687_s0 + $0x8] sm:$0xff]   ;;  %v6625_v12 = vld [vmem:[%s7687_s0 + $0x10] sm:$0xff]   ;;  %vm3711_vm5 = vcmask 130048  }
   0x4   :  { %5853 = vmatprep.subr.bf16.mxu1 %v6739_v3  ;;  %5857 = vmatprep.mubr.msk.bf16.mxu1 %vm103_vm2, %v6615_v6  ;;  %v6618_v13 = vld [vmem:[%s7687_s0 + $0x58] sm:$0xff]   ;;  %v6619_v14 = vld [vmem:[%s7687_s0 + $0x60] sm:$0xff]   ;;  %v6620_v17 = vld [vmem:[%s7687_s0 + $0x68] sm:$0xff]  }
   0x5   :  { %5831 = vmatprep.subr.bf16.mxu0 %v6739_v3  ;;  %5835 = vmatprep.mubr.msk.bf16.mxu0 %vm103_vm2, %v6623_v10  ;;  %v6626_v15 = vld [vmem:[%s7687_s0 + $0x18] sm:$0xff]   ;;  %v6627_v16 = vld [vmem:[%s7687_s0 + $0x20] sm:$0xff]   ;;  %v6621_v18 = vld [vmem:[%s7687_s0 + $0x70] sm:$0xff]  }
   0x6   :  { %v6628_v19 = vld [vmem:[%s7687_s0 + $0x28] sm:$0xff]   ;;  %v6629_v20 = vld [vmem:[%s7687_s0 + $0x30] sm:$0xff]   ;;  %v6622_v21 = vld [vmem:[%s7687_s0 + $0x78] sm:$0xff]  }
   0x7   :  { %5854 = vmatpush3.bf16.msra.mxu1 %v6739_v3  ;;  %5832 = vmatpush3.bf16.msra.mxu0 %v6739_v3  ;;  %v6630_v22 = vld [vmem:[%s7687_s0 + $0x38] sm:$0xff]   ;;  %v6631_v23 = vld [vmem:[%s7687_s0 + $0x80] sm:$0xff]   ;;  %v6632_v24 = vld [vmem:[%s7687_s0 + $0x88] sm:$0xff]  }
   0x8   :  { %5855 = vmatprep.subr.bf16.mxu1 %v6752_v7  ;;  %5833 = vmatprep.subr.bf16.mxu0 %v6752_v7  ;;  %v6633_v25 = vld [vmem:[%s7687_s0 + $0x90] sm:$0xff]   ;;  %v6634_v26 = vld [vmem:[%s7687_s0 + $0x98] sm:$0xff]   ;;  %v5089_v27 = vld [vmem:[%s7688_s2 + $0x8] sm:$0xff] }
   0x9   :  { %v6635_v28 = vld [vmem:[%s7687_s0 + $0xa0] sm:$0xff]   ;;  %v6636_v29 = vld [vmem:[%s7687_s0 + $0xa8] sm:$0xff]   ;;  %v6637_v30 = vld [vmem:[%s7687_s0 + $0xb0] sm:$0xff]  }
   0xa   :  { %v6638_v31 = vld [vmem:[%s7687_s0 + $0xb8] sm:$0xff]   ;;  %v6639_v32 = vld [vmem:[%s7687_s0 + $0xc0] sm:$0xff]   ;;  %v6640_v33 = vld [vmem:[%s7687_s0 + $0xc8] sm:$0xff]  }
   0xb   :  { %5856 = vmatpush3.bf16.msra.mxu1 %v6752_v7  ;;  %5834 = vmatpush3.bf16.msra.mxu0 %v6752_v7  ;;  %v6641_v34 = vld [vmem:[%s7687_s0 + $0xd0] sm:$0xff]   ;;  %v6642_v35 = vld [vmem:[%s7687_s0 + $0xd8] sm:$0xff]   ;;  %v6643_v36 = vld [vmem:[%s7687_s0 + $0xe0] sm:$0xff]  }
   0xc   :  { %5925 = vmatprep.subr.bf16.mxu1 %v6734_v0  ;;  %5873 = vmatprep.subr.mxu0 %v5089_v27  ;;  %v6644_v37 = vld [vmem:[%s7687_s0 + $0xe8] sm:$0xff]   ;;  %v6645_v38 = vld [vmem:[%s7687_s0 + $0xf0] sm:$0xff]   ;;  %v6646_v39 = vld [vmem:[%s7687_s0 + $0xf8] sm:$0xff]  }
   0xd   :  { %v6647_v40 = vld [vmem:[%s7687_s0 + $0x100] sm:$0xff]   ;;  %v6648_v42 = vld [vmem:[%s7687_s0 + $0x108] sm:$0xff]   ;;  %v6649_v43 = vld [vmem:[%s7687_s0 + $0x110] sm:$0xff]  }
   0xe   :  { %5858 = vmatmul.mubr.msk.bf16.vlgmr.msra.gmra.mrb[0].mxu1 %vm103_vm2, %v6616_v8  ;;  %5836 = vmatmul.mubr.msk.bf16.vlgmr.msra.gmra.mrb[0].mxu0 %vm103_vm2, %v6624_v11  ;;  %v6913_v41 = vld [vmem:[%s7688_s2] sm:$0xff]  ;;  %v6650_v44 = vld [vmem:[%s7687_s0 + $0x118] sm:$0xff]   ;;  %v6652_v46 = vld [vmem:[%s7687_s0 + $0x128] sm:$0xff]  }
   0xf   :  { %5861 = vmatprep.mubr.msk.bf16.mxu1 %vm103_vm2, %v6617_v9  ;;  %5926 = vmatpush3.bf16.msra.mxu1 %v6734_v0  ;;  %v6651_v45 = vld [vmem:[%s7687_s0 + $0x120] sm:$0xff]   ;;  %v6653_v47 = vld [vmem:[%s7687_s0 + $0x130] sm:$0xff]   ;;  %v6654_v48 = vld [vmem:[%s7687_s0 + $0x138] sm:$0xff]  }
  0x10   :  { %5839 = vmatprep.mubr.msk.bf16.mxu0 %vm103_vm2, %v6625_v12  ;;  %5927 = vmatprep.subr.bf16.mxu1 %v6739_v3  ;;  %v6655_v49 = vld [vmem:[%s7687_s0 + $0x140] sm:$0xff]   ;;  %v6656_v50 = vld [vmem:[%s7687_s0 + $0x148] sm:$0xff]   ;;  %v6657_v51 = vld [vmem:[%s7687_s0 + $0x150] sm:$0xff]  }
  0x11   :  { %5874 = vmatpush3.msra.mxu0 %v5089_v27  ;;  %v6658_v52 = vld [vmem:[%s7687_s0 + $0x158] sm:$0xff]   ;;  %v6659_v53 = vld [vmem:[%s7687_s0 + $0x160] sm:$0xff]   ;;  %v6660_v54 = vld [vmem:[%s7687_s0 + $0x168] sm:$0xff]  }
  0x12   :  { %5899 = vmatprep.subr.mxu0 %v6913_v41  ;;  %v6661_v55 = vld [vmem:[%s7687_s0 + $0x170] sm:$0xff]   ;;  %v6662_v56 = vld [vmem:[%s7687_s0 + $0x178] sm:$0xff]   ;;  %v6663_v57 = vld [vmem:[%s7687_s0 + $0x180] sm:$0xff]  }
  0x13   :  { %5928 = vmatpush3.bf16.msra.mxu1 %v6739_v3  ;;  %v6664_v58 = vld [vmem:[%s7687_s0 + $0x188] sm:$0xff]   ;;  %v6665_v59 = vld [vmem:[%s7687_s0 + $0x190] sm:$0xff]   ;;  %v6666_v60 = vld [vmem:[%s7687_s0 + $0x198] sm:$0xff]  }
  0x14   :  { %5929 = vmatprep.subr.bf16.mxu1 %v6752_v7  ;;  %v6667_v61 = vld [vmem:[%s7687_s0 + $0x1a0] sm:$0xff]   ;;  %v6668_v62 = vld [vmem:[%s7687_s0 + $0x1a8] sm:$0xff]   ;;  %v6669_v63 = vld [vmem:[%s7687_s0 + $0x1b0] sm:$0xff]  }
  0x15   :  { %v6670_v1 = vld [vmem:[%s7687_s0 + $0x1b8] sm:$0xff]   ;;  %v6671_v2 = vld [vmem:[%s7687_s0 + $0x1c0] sm:$0xff]   ;;  %v6672_v4 = vld [vmem:[%s7687_s0 + $0x1c8] sm:$0xff]  }
  0x16   :  { %5862 = vmatmul.mubr.msk.bf16.gmra.mrb[4].mxu1 %vm103_vm2, %v6618_v13  ;;  %5840 = vmatmul.mubr.msk.bf16.gmra.mrb[4].mxu0 %vm103_vm2, %v6626_v15  ;;  %v6673_v5 = vld [vmem:[%s7687_s0 + $0x1d0] sm:$0xff]   ;;  %v6674_v6 = vld [vmem:[%s7687_s0 + $0x1d8] sm:$0xff]   ;;  %v6675_v8 = vld [vmem:[%s7687_s0 + $0x1e0] sm:$0xff]  }
  0x17   :  { %5865 = vmatprep.mubr.msk.bf16.mxu1 %vm103_vm2, %v6619_v14  ;;  %5843 = vmatprep.mubr.msk.bf16.mxu0 %vm103_vm2, %v6627_v16  ;;  %v6679_v16 = vld [vmem:[%s7687_s0 + $0x200] sm:$0xff]   ;;  %v6680_v27 = vld [vmem:[%s7687_s0 + $0x208] sm:$0xff]  }
  0x18   :  { %5930 = vmatpush3.bf16.msra.mxu1 %v6752_v7 }
  0x19   :  { %5973 = vmatprep.subr.bf16.mxu1 %v6734_v0 }
  0x1e   :  { %5866 = vmatmul.mubr.msk.bf16.gmra.mrb[8].mxu1 %vm103_vm2, %v6620_v17  ;;  %5844 = vmatmul.mubr.msk.bf16.gmra.mrb[8].mxu0 %vm103_vm2, %v6628_v19 }
  0x1f   :  { %5869 = vmatprep.mubr.msk.bf16.mxu1 %vm103_vm2, %v6621_v18  ;;  %5847 = vmatprep.mubr.msk.bf16.mxu0 %vm103_vm2, %v6629_v20 }
  0x26   :  { %5870 = vmatmul.mubr.msk.bf16.gmra.mrb[12].mxu1 %vm103_vm2, %v6622_v21  ;;  %5848 = vmatmul.mubr.msk.bf16.gmra.mrb[12].mxu0 %vm103_vm2, %v6630_v22  ;;  %v7080_v21 = vld [vmem:[%s7688_s2 + $0x10] sm:$0xff] }
  0x27   :  { %5931 = vmatprep.mubr.msk.bf16.mxu1 %vm103_vm2, %v6631_v23 }
  0x2e   :  { %5932 = vmatmul.mubr.msk.bf16.vlgmr.msra.gmra.mrb[16].mxu1 %vm103_vm2, %v6632_v24 }
  0x2f   :  { %5974 = vmatpush3.bf16.msra.mxu1 %v6734_v0  ;;  %5935 = vmatprep.mubr.msk.bf16.mxu1 %vm103_vm2, %v6633_v25 }
  0x30   :  { %5975 = vmatprep.subr.bf16.mxu1 %v6739_v3 }
  0x33   :  { %5976 = vmatpush3.bf16.msra.mxu1 %v6739_v3 }
  0x34   :  { %5977 = vmatprep.subr.bf16.mxu1 %v6752_v7 }
  0x36   :  { %5936 = vmatmul.mubr.msk.bf16.gmra.mrb[20].mxu1 %vm103_vm2, %v6634_v26 }
  0x37   :  { %5939 = vmatprep.mubr.msk.bf16.mxu1 %vm103_vm2, %v6635_v28  ;;  %5978 = vmatpush3.bf16.msra.mxu1 %v6752_v7 }
  0x38   :  { %6021 = vmatprep.subr.bf16.mxu1 %v6734_v0 }
  0x3e   :  { %5940 = vmatmul.mubr.msk.bf16.gmra.mrb[24].mxu1 %vm103_vm2, %v6636_v29 }
  0x3f   :  { %5943 = vmatprep.mubr.msk.bf16.mxu1 %vm103_vm2, %v6637_v30 }
  0x46   :  { %5944 = vmatmul.mubr.msk.bf16.gmra.mrb[28].mxu1 %vm103_vm2, %v6638_v31  ;;  %v6681_v31 = vld [vmem:[%s7687_s0 + $0x210] sm:$0xff]  }
  0x47   :  { %5979 = vmatprep.mubr.msk.bf16.mxu1 %vm103_vm2, %v6639_v32 }
  0x4e   :  { %5980 = vmatmul.mubr.msk.bf16.vlgmr.msra.gmra.mrb[32].mxu1 %vm103_vm2, %v6640_v33 }
  0x4f   :  { %6022 = vmatpush3.bf16.msra.mxu1 %v6734_v0  ;;  %5983 = vmatprep.mubr.msk.bf16.mxu1 %vm103_vm2, %v6641_v34 }
  0x50   :  { %6023 = vmatprep.subr.bf16.mxu1 %v6739_v3 }
  0x53   :  { %6024 = vmatpush3.bf16.msra.mxu1 %v6739_v3 }
  0x54   :  { %6025 = vmatprep.subr.bf16.mxu1 %v6752_v7 }
  0x56   :  { %5984 = vmatmul.mubr.msk.bf16.gmra.mrb[36].mxu1 %vm103_vm2, %v6642_v35 }
  0x57   :  { %5987 = vmatprep.mubr.msk.bf16.mxu1 %vm103_vm2, %v6643_v36  ;;  %6026 = vmatpush3.bf16.msra.mxu1 %v6752_v7 }
  0x58   :  { %6069 = vmatprep.subr.bf16.mxu1 %v6734_v0 }
  0x5e   :  { %5988 = vmatmul.mubr.msk.bf16.gmra.mrb[40].mxu1 %vm103_vm2, %v6644_v37 }
  0x5f   :  { %5991 = vmatprep.mubr.msk.bf16.mxu1 %vm103_vm2, %v6645_v38 }
  0x66   :  { %5992 = vmatmul.mubr.msk.bf16.gmra.mrb[44].mxu1 %vm103_vm2, %v6646_v39 }
  0x67   :  { %6027 = vmatprep.mubr.msk.bf16.mxu1 %vm103_vm2, %v6647_v40 }
  0x6e   :  { %6028 = vmatmul.mubr.msk.bf16.vlgmr.msra.gmra.mrb[48].mxu1 %vm103_vm2, %v6648_v42 }
  0x6f   :  { %6070 = vmatpush3.bf16.msra.mxu1 %v6734_v0  ;;  %6031 = vmatprep.mubr.msk.bf16.mxu1 %vm103_vm2, %v6649_v43 }
  0x70   :  { %6071 = vmatprep.subr.bf16.mxu1 %v6739_v3 }
  0x73   :  { %6072 = vmatpush3.bf16.msra.mxu1 %v6739_v3 }
  0x74   :  { %6073 = vmatprep.subr.bf16.mxu1 %v6752_v7 }
  0x76   :  { %6032 = vmatmul.mubr.msk.bf16.gmra.mrb[52].mxu1 %vm103_vm2, %v6650_v44 }
  0x77   :  { %6035 = vmatprep.mubr.msk.bf16.mxu1 %vm103_vm2, %v6651_v45  ;;  %6074 = vmatpush3.bf16.msra.mxu1 %v6752_v7  ;;  %v6683_v45 = vld [vmem:[%s7687_s0 + $0x220] sm:$0xff]  }
  0x78   :  { %6117 = vmatprep.subr.bf16.mxu1 %v6734_v0 }
  0x7e   :  { %6036 = vmatmul.mubr.msk.bf16.gmra.mrb[56].mxu1 %vm103_vm2, %v6652_v46 }
  0x7f   :  { %6039 = vmatprep.mubr.msk.bf16.mxu1 %vm103_vm2, %v6653_v47 }
  0x86   :  { %6040 = vmatmul.mubr.msk.bf16.gmra.mrb[60].mxu1 %vm103_vm2, %v6654_v48 }
  0x87   :  { %6075 = vmatprep.mubr.msk.bf16.mxu1 %vm103_vm2, %v6655_v49 }
  0x8e   :  { %6076 = vmatmul.mubr.msk.bf16.vlgmr.msra.gmra.mrb[64].mxu1 %vm103_vm2, %v6656_v50 }
  0x8f   :  { %6118 = vmatpush3.bf16.msra.mxu1 %v6734_v0  ;;  %6079 = vmatprep.mubr.msk.bf16.mxu1 %vm103_vm2, %v6657_v51 }
  0x90   :  { %6119 = vmatprep.subr.bf16.mxu1 %v6739_v3 }
  0x93   :  { %6120 = vmatpush3.bf16.msra.mxu1 %v6739_v3 }
  0x94   :  { %6121 = vmatprep.subr.bf16.mxu1 %v6752_v7 }
  0x96   :  { %6080 = vmatmul.mubr.msk.bf16.gmra.mrb[68].mxu1 %vm103_vm2, %v6658_v52 }
  0x97   :  { %6083 = vmatprep.mubr.msk.bf16.mxu1 %vm103_vm2, %v6659_v53  ;;  %6122 = vmatpush3.bf16.msra.mxu1 %v6752_v7 }
  0x98   :  { %6165 = vmatprep.subr.bf16.mxu1 %v6734_v0 }
  0x9e   :  { %6084 = vmatmul.mubr.msk.bf16.gmra.mrb[72].mxu1 %vm103_vm2, %v6660_v54 }
  0x9f   :  { %6087 = vmatprep.mubr.msk.bf16.mxu1 %vm103_vm2, %v6661_v55  ;;  %v6684_v55 = vld [vmem:[%s7687_s0 + $0x228] sm:$0xff]  }
  0xa6   :  { %6088 = vmatmul.mubr.msk.bf16.gmra.mrb[76].mxu1 %vm103_vm2, %v6662_v56 }
  0xa7   :  { %6123 = vmatprep.mubr.msk.bf16.mxu1 %vm103_vm2, %v6663_v57 }
  0xae   :  { %6124 = vmatmul.mubr.msk.bf16.vlgmr.msra.gmra.mrb[80].mxu1 %vm103_vm2, %v6664_v58 }
  0xaf   :  { %6166 = vmatpush3.bf16.msra.mxu1 %v6734_v0  ;;  %6127 = vmatprep.mubr.msk.bf16.mxu1 %vm103_vm2, %v6665_v59  ;;  %v6685_v59 = vld [vmem:[%s7687_s0 + $0x230] sm:$0xff]  }
  0xb0   :  { %6167 = vmatprep.subr.bf16.mxu1 %v6739_v3 }
  0xb3   :  { %6168 = vmatpush3.bf16.msra.mxu1 %v6739_v3 }
  0xb4   :  { %6169 = vmatprep.subr.bf16.mxu1 %v6752_v7 }
  0xb6   :  { %6128 = vmatmul.mubr.msk.bf16.gmra.mrb[84].mxu1 %vm103_vm2, %v6666_v60 }
  0xb7   :  { %6131 = vmatprep.mubr.msk.bf16.mxu1 %vm103_vm2, %v6667_v61  ;;  %6170 = vmatpush3.bf16.msra.mxu1 %v6752_v7 }
  0xb8   :  { %6213 = vmatprep.subr.bf16.mxu1 %v6734_v0 }
  0xbe   :  { %6132 = vmatmul.mubr.msk.bf16.gmra.mrb[88].mxu1 %vm103_vm2, %v6668_v62 }
  0xbf   :  { %6135 = vmatprep.mubr.msk.bf16.mxu1 %vm103_vm2, %v6669_v63 }
  0xc6   :  { %6136 = vmatmul.mubr.msk.bf16.gmra.mrb[92].mxu1 %vm103_vm2, %v6670_v1 }
  0xc7   :  { %6171 = vmatprep.mubr.msk.bf16.mxu1 %vm103_vm2, %v6671_v2 }
  0xce   :  { %6172 = vmatmul.mubr.msk.bf16.vlgmr.msra.gmra.mrb[96].mxu1 %vm103_vm2, %v6672_v4 }
  0xcf   :  { %6214 = vmatpush3.bf16.msra.mxu1 %v6734_v0  ;;  %6175 = vmatprep.mubr.msk.bf16.mxu1 %vm103_vm2, %v6673_v5  ;;  %v6676_v0 = vld [vmem:[%s7687_s0 + $0x1e8] sm:$0xff]  }
  0xd0   :  { %6215 = vmatprep.subr.bf16.mxu1 %v6739_v3 }
  0xd3   :  { %6216 = vmatpush3.bf16.msra.mxu1 %v6739_v3  ;;  %v6677_v3 = vld [vmem:[%s7687_s0 + $0x1f0] sm:$0xff]  }
  0xd4   :  { %6217 = vmatprep.subr.bf16.mxu1 %v6752_v7 }
  0xd6   :  { %6176 = vmatmul.mubr.msk.bf16.gmra.mrb[100].mxu1 %vm103_vm2, %v6674_v6  ;;  %v6686_v6 = vld [vmem:[%s7687_s0 + $0x238] sm:$0xff]  }
  0xd7   :  { %6179 = vmatprep.mubr.msk.bf16.mxu1 %vm103_vm2, %v6675_v8  ;;  %6218 = vmatpush3.bf16.msra.mxu1 %v6752_v7  ;;  %v6678_v7 = vld [vmem:[%s7687_s0 + $0x1f8] sm:$0xff]  }
  0xde   :  { %6180 = vmatmul.mubr.msk.bf16.gmra.mrb[104].mxu1 %vm103_vm2, %v6676_v0 }
  0xdf   :  { %6183 = vmatprep.mubr.msk.bf16.mxu1 %vm103_vm2, %v6677_v3 }
  0xe1   :  { %v5859_v9 = vpop.f32.mrb[0].mxu1  ;;  %v7061_v10 = vpop.f32.mrb[0].mxu0 }
  0xe2   :  { %v364_v11 = vpop.f32.mrb[1].mxu1  ;;  %v7063_v12 = vpop.f32.mrb[1].mxu0  ;;  %v429_v20 = vmax.f32 %v5859_v9, 0.0  ;;  %v234_v9 = vmax.f32 %v7061_v10, 0.0 }
  0xe3   :  { %v427_v13 = vmax.f32 %v364_v11, 0.0  ;;  %v5860_v14 = vpop.f32.mrb[2].mxu1  ;;  %v7068_v15 = vpop.f32.mrb[2].mxu0  ;;  %v232_v1 = vmax.f32 %v7063_v12, 0.0  ;;  %v5203_v11 = vld [vmem:[%s7688_s2 + $0x18] sm:$0xff] }
  0xe4   :  { %v367_v17 = vpop.f32.mrb[3].mxu1  ;;  %v7073_v18 = vpop.f32.mrb[3].mxu0  ;;  %v430_v22 = vmax.f32 %v5860_v14, 0.0 }
  0xe5   :  { %v428_v19 = vmax.f32 %v367_v17, 0.0  ;;  %5875 = vmatprep.mubr.msk.f32.mxu0 %vm445_vm3, %v427_v13  ;;  %v233_v3 = vmax.f32 %v7073_v18, 0.0 }
  0xe6   :  { %6184 = vmatmul.mubr.msk.bf16.gmra.mrb[108].mxu1 %vm103_vm2, %v6678_v7  ;;  %v235_v7 = vmax.f32 %v7068_v15, 0.0 }
  0xe7   :  { %5876 = vmatmul.mubr.msk.f32.vlgmr.msra.gmra.mrb[16].mxu0 %vm445_vm3, %v428_v19  ;;  %6219 = vmatprep.mubr.msk.bf16.mxu1 %vm103_vm2, %v6679_v16 }
  0xe8   :  { %5900 = vmatpush3.msra.mxu0 %v6913_v41  ;;  %5878 = vmatprep.mubr.msk.f32.mxu0 %vm445_vm3, %v429_v20  ;;  %v6682_v41 = vld [vmem:[%s7687_s0 + $0x218] sm:$0xff]  }
  0xe9   :  { %v5863_v23 = vpop.f32.mrb[4].mxu1  ;;  %v7086_v24 = vpop.f32.mrb[4].mxu0  ;;  %5947 = vmatprep.subr.mxu0 %v7080_v21 }
  0xea   :  { %v380_v25 = vpop.f32.mrb[5].mxu1  ;;  %v7089_v26 = vpop.f32.mrb[5].mxu0  ;;  %v433_v35 = vmax.f32 %v5863_v23, 0.0  ;;  %v238_v18 = vmax.f32 %v7086_v24, 0.0 }
  0xeb   :  { %v431_v28 = vmax.f32 %v380_v25, 0.0  ;;  %v5864_v29 = vpop.f32.mrb[6].mxu1  ;;  %5879 = vmatmul.mubr.msk.f32.gmra.mrb[18].mxu0 %vm445_vm3, %v430_v22  ;;  %v7095_v30 = vpop.f32.mrb[6].mxu0  ;;  %v236_v12 = vmax.f32 %v7089_v26, 0.0 }
  0xec   :  { %v383_v32 = vpop.f32.mrb[7].mxu1  ;;  %v7100_v33 = vpop.f32.mrb[7].mxu0  ;;  %v434_v36 = vmax.f32 %v5864_v29, 0.0  ;;  %v239_v15 = vmax.f32 %v7095_v30, 0.0 }
  0xed   :  { %v432_v34 = vmax.f32 %v383_v32, 0.0  ;;  %5881 = vmatprep.mubr.msk.f32.mxu0 %vm445_vm3, %v431_v28  ;;  %v237_v17 = vmax.f32 %v7100_v33, 0.0 }
  0xee   :  { %6220 = vmatmul.mubr.msk.bf16.vlgmr.msra.gmra.mrb[112].mxu1 %vm103_vm2, %v6680_v27 }
  0xef   :  { %5882 = vmatmul.mubr.msk.f32.gmra.mrb[20].mxu0 %vm445_vm3, %v432_v34  ;;  %6223 = vmatprep.mubr.msk.bf16.mxu1 %vm103_vm2, %v6681_v31 }
  0xf0   :  { %5884 = vmatprep.mubr.msk.f32.mxu0 %vm445_vm3, %v433_v35 }
  0xf1   :  { %v5867_v37 = vpop.f32.mrb[8].mxu1  ;;  %v7107_v38 = vpop.f32.mrb[8].mxu0 }
  0xf2   :  { %v396_v39 = vpop.f32.mrb[9].mxu1  ;;  %v7109_v40 = vpop.f32.mrb[9].mxu0  ;;  %v437_v49 = vmax.f32 %v5867_v37, 0.0  ;;  %v242_v24 = vmax.f32 %v7107_v38, 0.0 }
  0xf3   :  { %v435_v42 = vmax.f32 %v396_v39, 0.0  ;;  %v5868_v43 = vpop.f32.mrb[10].mxu1  ;;  %5885 = vmatmul.mubr.msk.f32.gmra.mrb[22].mxu0 %vm445_vm3, %v434_v36  ;;  %v7115_v44 = vpop.f32.mrb[10].mxu0  ;;  %v240_v19 = vmax.f32 %v7109_v40, 0.0 }
  0xf4   :  { %v399_v46 = vpop.f32.mrb[11].mxu1  ;;  %v7120_v47 = vpop.f32.mrb[11].mxu0  ;;  %v438_v50 = vmax.f32 %v5868_v43, 0.0  ;;  %v243_v27 = vmax.f32 %v7115_v44, 0.0 }
  0xf5   :  { %v436_v48 = vmax.f32 %v399_v46, 0.0  ;;  %5887 = vmatprep.mubr.msk.f32.mxu0 %vm445_vm3, %v435_v42  ;;  %v241_v25 = vmax.f32 %v7120_v47, 0.0  ;;  %v5252_v42 = vld [vmem:[%s7688_s2 + $0x20] sm:$0xff] }
  0xf6   :  { %6224 = vmatmul.mubr.msk.bf16.gmra.mrb[116].mxu1 %vm103_vm2, %v6682_v41 }
  0xf7   :  { %5888 = vmatmul.mubr.msk.f32.gmra.mrb[24].mxu0 %vm445_vm3, %v436_v48  ;;  %6227 = vmatprep.mubr.msk.bf16.mxu1 %vm103_vm2, %v6683_v45 }
  0xf8   :  { %5890 = vmatprep.mubr.msk.f32.mxu0 %vm445_vm3, %v437_v49 }
  0xf9   :  { %v5871_v51 = vpop.f32.mrb[12].mxu1  ;;  %v7127_v52 = vpop.f32.mrb[12].mxu0 }
  0xfa   :  { %v412_v53 = vpop.f32.mrb[13].mxu1  ;;  %v7129_v54 = vpop.f32.mrb[13].mxu0  ;;  %v441_v63 = vmax.f32 %v5871_v51, 0.0  ;;  %v246_v33 = vmax.f32 %v7127_v52, 0.0 }
  0xfb   :  { %v439_v56 = vmax.f32 %v412_v53, 0.0  ;;  %v5872_v57 = vpop.f32.mrb[14].mxu1  ;;  %5891 = vmatmul.mubr.msk.f32.gmra.mrb[26].mxu0 %vm445_vm3, %v438_v50  ;;  %v7135_v58 = vpop.f32.mrb[14].mxu0  ;;  %v244_v26 = vmax.f32 %v7129_v54, 0.0 }
  0xfc   :  { %v415_v60 = vpop.f32.mrb[15].mxu1  ;;  %v220_v61 = vpop.f32.mrb[15].mxu0  ;;  %v442_v2 = vmax.f32 %v5872_v57, 0.0  ;;  %v247_v35 = vmax.f32 %v7135_v58, 0.0 }
  0xfd   :  { %v440_v62 = vmax.f32 %v415_v60, 0.0  ;;  %5893 = vmatprep.mubr.msk.f32.mxu0 %vm445_vm3, %v439_v56  ;;  %v245_v32 = vmax.f32 %v220_v61, 0.0 }
  0xfe   :  { %6228 = vmatmul.mubr.msk.bf16.gmra.mrb[120].mxu1 %vm103_vm2, %v6684_v55 }
  0xff   :  { %5894 = vmatmul.mubr.msk.f32.gmra.mrb[28].mxu0 %vm445_vm3, %v440_v62  ;;  %6231 = vmatprep.mubr.msk.bf16.mxu1 %vm103_vm2, %v6685_v59 }
 0x100   :  { %5896 = vmatprep.mubr.msk.f32.mxu0 %vm445_vm3, %v441_v63 }
 0x101   :  { %v7146_v4 = vpop.f32.mrb[16].mxu1 }
 0x102   :  { %v947_v5 = vpop.f32.mrb[17].mxu1  ;;  %v1012_v41 = vmax.f32 %v7146_v4, 0.0 }
 0x103   :  { %5897 = vmatmul.mubr.msk.f32.gmra.mrb[30].mxu0 %vm445_vm3, %v442_v2  ;;  %v7152_v8 = vpop.f32.mrb[18].mxu1  ;;  %v1010_v34 = vmax.f32 %v947_v5, 0.0 }
 0x104   :  { %5901 = vmatprep.mubr.msk.f32.mxu0 %vm445_vm3, %v232_v1  ;;  %v950_v0 = vpop.f32.mrb[19].mxu1  ;;  %v1013_v44 = vmax.f32 %v7152_v8, 0.0 }
 0x105   :  { %v1011_v40 = vmax.f32 %v950_v0, 0.0 }
 0x106   :  { %6232 = vmatmul.mubr.msk.bf16.gmra.mrb[124].mxu1 %vm103_vm2, %v6686_v6 }
 0x107   :  { %5902 = vmatmul.mubr.msk.f32.vlgmr.msra.gmra.mrb[16].mxu0 %vm445_vm3, %v233_v3 }
 0x108   :  { %5948 = vmatpush3.msra.mxu0 %v7080_v21  ;;  %5904 = vmatprep.mubr.msk.f32.mxu0 %vm445_vm3, %v234_v9 }
 0x109   :  { %v7166_v13 = vpop.f32.mrb[20].mxu1  ;;  %5995 = vmatprep.subr.mxu0 %v5203_v11 }
 0x10a   :  { %v963_v10 = vpop.f32.mrb[21].mxu1  ;;  %v1016_v50 = vmax.f32 %v7166_v13, 0.0 }
 0x10b   :  { %5905 = vmatmul.mubr.msk.f32.gmra.mrb[18].mxu0 %vm445_vm3, %v235_v7  ;;  %v7169_v14 = vpop.f32.mrb[22].mxu1  ;;  %v1014_v43 = vmax.f32 %v963_v10, 0.0  ;;  %v5301_v7 = vld [vmem:[%s7688_s2 + $0x28] sm:$0xff] }
 0x10c   :  { %5907 = vmatprep.mubr.msk.f32.mxu0 %vm445_vm3, %v236_v12  ;;  %v966_v16 = vpop.f32.mrb[23].mxu1  ;;  %v1017_v52 = vmax.f32 %v7169_v14, 0.0 }
 0x10d   :  { %v1015_v49 = vmax.f32 %v966_v16, 0.0 }
 0x10f   :  { %5908 = vmatmul.mubr.msk.f32.gmra.mrb[20].mxu0 %vm445_vm3, %v237_v17 }
 0x110   :  { %5910 = vmatprep.mubr.msk.f32.mxu0 %vm445_vm3, %v238_v18 }
 0x111   :  { %v5941_v20 = vpop.f32.mrb[24].mxu1 }
 0x112   :  { %v979_v21 = vpop.f32.mrb[25].mxu1  ;;  %v1020_v58 = vmax.f32 %v5941_v20, 0.0 }
 0x113   :  { %5911 = vmatmul.mubr.msk.f32.gmra.mrb[22].mxu0 %vm445_vm3, %v239_v15  ;;  %v7179_v22 = vpop.f32.mrb[26].mxu1  ;;  %v1018_v51 = vmax.f32 %v979_v21, 0.0 }
 0x114   :  { %5913 = vmatprep.mubr.msk.f32.mxu0 %vm445_vm3, %v240_v19  ;;  %v982_v23 = vpop.f32.mrb[27].mxu1  ;;  %v1021_v60 = vmax.f32 %v7179_v22, 0.0 }
 0x115   :  { %v1019_v57 = vmax.f32 %v982_v23, 0.0 }
 0x117   :  { %5914 = vmatmul.mubr.msk.f32.gmra.mrb[24].mxu0 %vm445_vm3, %v241_v25 }
 0x118   :  { %5916 = vmatprep.mubr.msk.f32.mxu0 %vm445_vm3, %v242_v24 }
 0x119   :  { %v5945_v28 = vpop.f32.mrb[28].mxu1 }
 0x11a   :  { %v995_v29 = vpop.f32.mrb[29].mxu1  ;;  %v1024_v4 = vmax.f32 %v5945_v28, 0.0 }
 0x11b   :  { %5917 = vmatmul.mubr.msk.f32.gmra.mrb[26].mxu0 %vm445_vm3, %v243_v27  ;;  %v7189_v30 = vpop.f32.mrb[30].mxu1  ;;  %v1022_v59 = vmax.f32 %v995_v29, 0.0 }
 0x11c   :  { %5919 = vmatprep.mubr.msk.f32.mxu0 %vm445_vm3, %v244_v26  ;;  %v998_v31 = vpop.f32.mrb[31].mxu1  ;;  %v1025_v6 = vmax.f32 %v7189_v30, 0.0 }
 0x11d   :  { %v1023_v2 = vmax.f32 %v998_v31, 0.0 }
 0x11f   :  { %5920 = vmatmul.mubr.msk.f32.gmra.mrb[28].mxu0 %vm445_vm3, %v245_v32 }
 0x120   :  { %5922 = vmatprep.mubr.msk.f32.mxu0 %vm445_vm3, %v246_v33 }
 0x121   :  { %v7196_v36 = vpop.f32.mrb[32].mxu1 }
 0x122   :  { %v1352_v37 = vpop.f32.mrb[33].mxu1  ;;  %v1417_v12 = vmax.f32 %v7196_v36, 0.0 }
 0x123   :  { %5923 = vmatmul.mubr.msk.f32.gmra.mrb[30].mxu0 %vm445_vm3, %v247_v35  ;;  %v7199_v38 = vpop.f32.mrb[34].mxu1  ;;  %v1415_v5 = vmax.f32 %v1352_v37, 0.0 }
 0x124   :  { %5949 = vmatprep.mubr.msk.f32.mxu0 %vm445_vm3, %v1010_v34  ;;  %v1355_v39 = vpop.f32.mrb[35].mxu1  ;;  %v1418_v10 = vmax.f32 %v7199_v38, 0.0 }
 0x127   :  { %5950 = vmatmul.mubr.msk.f32.vlgmr.msra.gmra.mrb[16].mxu0 %vm445_vm3, %v1011_v40 }
 0x128   :  { %5996 = vmatpush3.msra.mxu0 %v5203_v11  ;;  %5952 = vmatprep.mubr.msk.f32.mxu0 %vm445_vm3, %v1012_v41  ;;  %v1416_v11 = vmax.f32 %v1355_v39, 0.0 }
 0x129   :  { %v7209_v45 = vpop.f32.mrb[36].mxu1  ;;  %6043 = vmatprep.subr.mxu0 %v5252_v42 }
 0x12a   :  { %v1368_v46 = vpop.f32.mrb[37].mxu1  ;;  %v1421_v15 = vmax.f32 %v7209_v45, 0.0 }
 0x12b   :  { %5953 = vmatmul.mubr.msk.f32.gmra.mrb[18].mxu0 %vm445_vm3, %v1013_v44  ;;  %v7212_v47 = vpop.f32.mrb[38].mxu1  ;;  %v1419_v13 = vmax.f32 %v1368_v46, 0.0  ;;  %v5350_v44 = vld [vmem:[%s7688_s2 + $0x30] sm:$0xff] }
 0x12c   :  { %5955 = vmatprep.mubr.msk.f32.mxu0 %vm445_vm3, %v1014_v43  ;;  %v1371_v48 = vpop.f32.mrb[39].mxu1  ;;  %v1422_v21 = vmax.f32 %v7212_v47, 0.0 }
 0x12d   :  { %v1420_v19 = vmax.f32 %v1371_v48, 0.0 }
 0x12f   :  { %5956 = vmatmul.mubr.msk.f32.gmra.mrb[20].mxu0 %vm445_vm3, %v1015_v49 }
 0x130   :  { %5958 = vmatprep.mubr.msk.f32.mxu0 %vm445_vm3, %v1016_v50 }
 0x131   :  { %v5989_v53 = vpop.f32.mrb[40].mxu1 }
 0x132   :  { %v1384_v54 = vpop.f32.mrb[41].mxu1  ;;  %v1425_v27 = vmax.f32 %v5989_v53, 0.0 }
 0x133   :  { %5959 = vmatmul.mubr.msk.f32.gmra.mrb[22].mxu0 %vm445_vm3, %v1017_v52  ;;  %v7220_v55 = vpop.f32.mrb[42].mxu1  ;;  %v1423_v20 = vmax.f32 %v1384_v54, 0.0 }
 0x134   :  { %5961 = vmatprep.mubr.msk.f32.mxu0 %vm445_vm3, %v1018_v51  ;;  %v1387_v56 = vpop.f32.mrb[43].mxu1  ;;  %v1426_v29 = vmax.f32 %v7220_v55, 0.0 }
 0x135   :  { %v1424_v26 = vmax.f32 %v1387_v56, 0.0 }
 0x137   :  { %5962 = vmatmul.mubr.msk.f32.gmra.mrb[24].mxu0 %vm445_vm3, %v1019_v57 }
 0x138   :  { %5964 = vmatprep.mubr.msk.f32.mxu0 %vm445_vm3, %v1020_v58 }
 0x139   :  { %v5993_v61 = vpop.f32.mrb[44].mxu1 }
 0x13a   :  { %v1400_v62 = vpop.f32.mrb[45].mxu1  ;;  %v1429_v35 = vmax.f32 %v5993_v61, 0.0 }
 0x13b   :  { %5965 = vmatmul.mubr.msk.f32.gmra.mrb[26].mxu0 %vm445_vm3, %v1021_v60  ;;  %v7227_v63 = vpop.f32.mrb[46].mxu1  ;;  %v1427_v28 = vmax.f32 %v1400_v62, 0.0 }
 0x13c   :  { %5967 = vmatprep.mubr.msk.f32.mxu0 %vm445_vm3, %v1022_v59  ;;  %v1403_v1 = vpop.f32.mrb[47].mxu1  ;;  %v1430_v37 = vmax.f32 %v7227_v63, 0.0 }
 0x13d   :  { %v1428_v34 = vmax.f32 %v1403_v1, 0.0 }
 0x13f   :  { %5968 = vmatmul.mubr.msk.f32.gmra.mrb[28].mxu0 %vm445_vm3, %v1023_v2 }
 0x140   :  { %5970 = vmatprep.mubr.msk.f32.mxu0 %vm445_vm3, %v1024_v4 }
 0x141   :  { %v7233_v8 = vpop.f32.mrb[48].mxu1 }
 0x142   :  { %v1757_v0 = vpop.f32.mrb[49].mxu1  ;;  %v1822_v43 = vmax.f32 %v7233_v8, 0.0 }
 0x143   :  { %5971 = vmatmul.mubr.msk.f32.gmra.mrb[30].mxu0 %vm445_vm3, %v1025_v6  ;;  %v7236_v3 = vpop.f32.mrb[50].mxu1  ;;  %v1820_v36 = vmax.f32 %v1757_v0, 0.0 }
 0x144   :  { %5997 = vmatprep.mubr.msk.f32.mxu0 %vm445_vm3, %v1415_v5  ;;  %v1760_v9 = vpop.f32.mrb[51].mxu1  ;;  %v1823_v46 = vmax.f32 %v7236_v3, 0.0 }
 0x147   :  { %5998 = vmatmul.mubr.msk.f32.vlgmr.msra.gmra.mrb[16].mxu0 %vm445_vm3, %v1416_v11 }
 0x148   :  { %6044 = vmatpush3.msra.mxu0 %v5252_v42  ;;  %6000 = vmatprep.mubr.msk.f32.mxu0 %vm445_vm3, %v1417_v12  ;;  %v1821_v42 = vmax.f32 %v1760_v9, 0.0 }
 0x149   :  { %v7246_v14 = vpop.f32.mrb[52].mxu1  ;;  %6091 = vmatprep.subr.mxu0 %v5301_v7 }
 0x14a   :  { %v1773_v16 = vpop.f32.mrb[53].mxu1  ;;  %v1826_v52 = vmax.f32 %v7246_v14, 0.0 }
 0x14b   :  { %6001 = vmatmul.mubr.msk.f32.gmra.mrb[18].mxu0 %vm445_vm3, %v1418_v10  ;;  %v7249_v17 = vpop.f32.mrb[54].mxu1  ;;  %v1824_v45 = vmax.f32 %v1773_v16, 0.0  ;;  %v5467_v10 = vld [vmem:[%s7689_s4 + $0x18] sm:$0xff] }
 0x14c   :  { %6003 = vmatprep.mubr.msk.f32.mxu0 %vm445_vm3, %v1419_v13  ;;  %v1776_v18 = vpop.f32.mrb[55].mxu1  ;;  %v1827_v54 = vmax.f32 %v7249_v17, 0.0  ;;  %v5466_v13 = vld [vmem:[%s7689_s4 + $0x10] sm:$0xff] }
 0x14d   :  { %v1825_v51 = vmax.f32 %v1776_v18, 0.0  ;;  %v6409_v16 = vpack.c.bf16 %v5467_v10, %v5466_v13  ;;  %v5399_v18 = vld [vmem:[%s7688_s2 + $0x38] sm:$0xff] }
 0x14f   :  { %6004 = vmatmul.mubr.msk.f32.gmra.mrb[20].mxu0 %vm445_vm3, %v1420_v19 }
 0x150   :  { %6006 = vmatprep.mubr.msk.f32.mxu0 %vm445_vm3, %v1421_v15 }
 0x151   :  { %v6037_v22 = vpop.f32.mrb[56].mxu1 }
 0x152   :  { %v1789_v23 = vpop.f32.mrb[57].mxu1  ;;  %v1830_v60 = vmax.f32 %v6037_v22, 0.0 }
 0x153   :  { %6007 = vmatmul.mubr.msk.f32.gmra.mrb[22].mxu0 %vm445_vm3, %v1422_v21  ;;  %v7257_v25 = vpop.f32.mrb[58].mxu1  ;;  %v1828_v53 = vmax.f32 %v1789_v23, 0.0 }
 0x154   :  { %6009 = vmatprep.mubr.msk.f32.mxu0 %vm445_vm3, %v1423_v20  ;;  %v1792_v24 = vpop.f32.mrb[59].mxu1  ;;  %v1831_v62 = vmax.f32 %v7257_v25, 0.0 }
 0x155   :  { %v1829_v59 = vmax.f32 %v1792_v24, 0.0 }
 0x157   :  { %6010 = vmatmul.mubr.msk.f32.gmra.mrb[24].mxu0 %vm445_vm3, %v1424_v26 }
 0x158   :  { %6012 = vmatprep.mubr.msk.f32.mxu0 %vm445_vm3, %v1425_v27 }
 0x159   :  { %v6041_v30 = vpop.f32.mrb[60].mxu1 }
 0x15a   :  { %v1805_v31 = vpop.f32.mrb[61].mxu1  ;;  %v1834_v6 = vmax.f32 %v6041_v30, 0.0 }
 0x15b   :  { %6013 = vmatmul.mubr.msk.f32.gmra.mrb[26].mxu0 %vm445_vm3, %v1426_v29  ;;  %v7264_v32 = vpop.f32.mrb[62].mxu1  ;;  %v1832_v61 = vmax.f32 %v1805_v31, 0.0 }
 0x15c   :  { %6015 = vmatprep.mubr.msk.f32.mxu0 %vm445_vm3, %v1427_v28  ;;  %v1808_v33 = vpop.f32.mrb[63].mxu1  ;;  %v1835_v0 = vmax.f32 %v7264_v32, 0.0 }
 0x15d   :  { %v1833_v5 = vmax.f32 %v1808_v33, 0.0 }
 0x15f   :  { %6016 = vmatmul.mubr.msk.f32.gmra.mrb[28].mxu0 %vm445_vm3, %v1428_v34 }
 0x160   :  { %6018 = vmatprep.mubr.msk.f32.mxu0 %vm445_vm3, %v1429_v35 }
 0x161   :  { %v7270_v38 = vpop.f32.mrb[64].mxu1 }
 0x162   :  { %v2162_v39 = vpop.f32.mrb[65].mxu1  ;;  %v2227_v17 = vmax.f32 %v7270_v38, 0.0 }
 0x163   :  { %6019 = vmatmul.mubr.msk.f32.gmra.mrb[30].mxu0 %vm445_vm3, %v1430_v37  ;;  %v7273_v40 = vpop.f32.mrb[66].mxu1  ;;  %v2225_v8 = vmax.f32 %v2162_v39, 0.0 }
 0x164   :  { %6045 = vmatprep.mubr.msk.f32.mxu0 %vm445_vm3, %v1820_v36  ;;  %v2165_v41 = vpop.f32.mrb[67].mxu1  ;;  %v2228_v15 = vmax.f32 %v7273_v40, 0.0 }
 0x165   :  { %v2226_v14 = vmax.f32 %v2165_v41, 0.0 }
 0x167   :  { %6046 = vmatmul.mubr.msk.f32.vlgmr.msra.gmra.mrb[16].mxu0 %vm445_vm3, %v1821_v42 }
 0x168   :  { %6092 = vmatpush3.msra.mxu0 %v5301_v7  ;;  %6048 = vmatprep.mubr.msk.f32.mxu0 %vm445_vm3, %v1822_v43  ;;  %v6688_v7 = vmov 0.0|0.0  }
 0x169   :  { %v7283_v47 = vpop.f32.mrb[68].mxu1  ;;  %6139 = vmatprep.subr.mxu0 %v5350_v44  ;;  %6408 = vmatprep.subr.bf16.mxu1 %v6688_v7 }
 0x16a   :  { %v7285_v48 = vpop.f32.mrb[69].mxu1  ;;  %6410 = vmatpush3.bf16.msra.mxu1 %v6409_v16  ;;  %v2231_v24 = vmax.f32 %v7283_v47, 0.0 }
 0x16b   :  { %6049 = vmatmul.mubr.msk.f32.gmra.mrb[18].mxu0 %vm445_vm3, %v1823_v46  ;;  %v7288_v49 = vpop.f32.mrb[70].mxu1  ;;  %v2229_v19 = vmax.f32 %v7285_v48, 0.0  ;;  %6411 = vmatprep.subr.bf16.mxu1 %v6688_v7 }
 0x16c   :  { %6051 = vmatprep.mubr.msk.f32.mxu0 %vm445_vm3, %v1824_v45  ;;  %v7291_v50 = vpop.f32.mrb[71].mxu1  ;;  %v2232_v27 = vmax.f32 %v7288_v49, 0.0 }
 0x16d   :  { %v2230_v25 = vmax.f32 %v7291_v50, 0.0  ;;  %v5448_v50 = vld [vmem:[%s7688_s2 + $0x40] sm:$0xff] }
 0x16f   :  { %6052 = vmatmul.mubr.msk.f32.gmra.mrb[20].mxu0 %vm445_vm3, %v1825_v51 }
 0x170   :  { %6054 = vmatprep.mubr.msk.f32.mxu0 %vm445_vm3, %v1826_v52 }
 0x171   :  { %v7297_v55 = vpop.f32.mrb[72].mxu1 }
 0x172   :  { %v7299_v56 = vpop.f32.mrb[73].mxu1  ;;  %v2235_v33 = vmax.f32 %v7297_v55, 0.0 }
 0x173   :  { %6055 = vmatmul.mubr.msk.f32.gmra.mrb[22].mxu0 %vm445_vm3, %v1827_v54  ;;  %v7302_v57 = vpop.f32.mrb[74].mxu1  ;;  %v2233_v26 = vmax.f32 %v7299_v56, 0.0 }
 0x174   :  { %6057 = vmatprep.mubr.msk.f32.mxu0 %vm445_vm3, %v1828_v53  ;;  %v7305_v58 = vpop.f32.mrb[75].mxu1  ;;  %v2236_v35 = vmax.f32 %v7302_v57, 0.0 }
 0x175   :  { %v2234_v32 = vmax.f32 %v7305_v58, 0.0 }
 0x177   :  { %6058 = vmatmul.mubr.msk.f32.gmra.mrb[24].mxu0 %vm445_vm3, %v1829_v59 }
 0x178   :  { %6060 = vmatprep.mubr.msk.f32.mxu0 %vm445_vm3, %v1830_v60 }
 0x179   :  { %v7310_v63 = vpop.f32.mrb[76].mxu1 }
 0x17a   :  { %v7312_v1 = vpop.f32.mrb[77].mxu1  ;;  %v2239_v41 = vmax.f32 %v7310_v63, 0.0 }
 0x17b   :  { %6061 = vmatmul.mubr.msk.f32.gmra.mrb[26].mxu0 %vm445_vm3, %v1831_v62  ;;  %v7315_v2 = vpop.f32.mrb[78].mxu1  ;;  %v2237_v34 = vmax.f32 %v7312_v1, 0.0 }
 0x17c   :  { %6063 = vmatprep.mubr.msk.f32.mxu0 %vm445_vm3, %v1832_v61  ;;  %v7318_v4 = vpop.f32.mrb[79].mxu1  ;;  %v2240_v43 = vmax.f32 %v7315_v2, 0.0 }
 0x17d   :  { %v2238_v40 = vmax.f32 %v7318_v4, 0.0 }
 0x17f   :  { %6064 = vmatmul.mubr.msk.f32.gmra.mrb[28].mxu0 %vm445_vm3, %v1833_v5 }
 0x180   :  { %6066 = vmatprep.mubr.msk.f32.mxu0 %vm445_vm3, %v1834_v6 }
 0x181   :  { %v7323_v3 = vpop.f32.mrb[80].mxu1 }
 0x182   :  { %v7325_v9 = vpop.f32.mrb[81].mxu1  ;;  %v2632_v49 = vmax.f32 %v7323_v3, 0.0 }
 0x183   :  { %6067 = vmatmul.mubr.msk.f32.gmra.mrb[30].mxu0 %vm445_vm3, %v1835_v0  ;;  %v7328_v11 = vpop.f32.mrb[82].mxu1  ;;  %v2630_v42 = vmax.f32 %v7325_v9, 0.0 }
 0x184   :  { %6093 = vmatprep.mubr.msk.f32.mxu0 %vm445_vm3, %v2225_v8  ;;  %v7331_v12 = vpop.f32.mrb[83].mxu1  ;;  %v2633_v52 = vmax.f32 %v7328_v11, 0.0 }
 0x185   :  { %v2631_v48 = vmax.f32 %v7331_v12, 0.0 }
 0x187   :  { %6094 = vmatmul.mubr.msk.f32.vlgmr.msra.gmra.mrb[16].mxu0 %vm445_vm3, %v2226_v14 }
 0x188   :  { %6140 = vmatpush3.msra.mxu0 %v5350_v44  ;;  %6096 = vmatprep.mubr.msk.f32.mxu0 %vm445_vm3, %v2227_v17 }
 0x189   :  { %v7348_v20 = vpop.f32.mrb[84].mxu1  ;;  %6187 = vmatprep.subr.mxu0 %v5399_v18 }
 0x18a   :  { %v2583_v21 = vpop.f32.mrb[85].mxu1  ;;  %v2636_v58 = vmax.f32 %v7348_v20, 0.0 }
 0x18b   :  { %6097 = vmatmul.mubr.msk.f32.gmra.mrb[18].mxu0 %vm445_vm3, %v2228_v15  ;;  %v7352_v22 = vpop.f32.mrb[86].mxu1  ;;  %v2634_v51 = vmax.f32 %v2583_v21, 0.0 }
 0x18c   :  { %6099 = vmatprep.mubr.msk.f32.mxu0 %vm445_vm3, %v2229_v19  ;;  %v2586_v23 = vpop.f32.mrb[87].mxu1  ;;  %v2637_v60 = vmax.f32 %v7352_v22, 0.0 }
 0x18d   :  { %v2635_v57 = vmax.f32 %v2586_v23, 0.0 }
 0x18f   :  { %6100 = vmatmul.mubr.msk.f32.gmra.mrb[20].mxu0 %vm445_vm3, %v2230_v25 }
 0x190   :  { %6102 = vmatprep.mubr.msk.f32.mxu0 %vm445_vm3, %v2231_v24 }
 0x191   :  { %v6133_v28 = vpop.f32.mrb[88].mxu1 }
 0x192   :  { %v2599_v29 = vpop.f32.mrb[89].mxu1  ;;  %v2640_v4 = vmax.f32 %v6133_v28, 0.0 }
 0x193   :  { %6103 = vmatmul.mubr.msk.f32.gmra.mrb[22].mxu0 %vm445_vm3, %v2232_v27  ;;  %v7362_v30 = vpop.f32.mrb[90].mxu1  ;;  %v2638_v59 = vmax.f32 %v2599_v29, 0.0 }
 0x194   :  { %6105 = vmatprep.mubr.msk.f32.mxu0 %vm445_vm3, %v2233_v26  ;;  %v2602_v31 = vpop.f32.mrb[91].mxu1  ;;  %v2641_v6 = vmax.f32 %v7362_v30, 0.0 }
 0x195   :  { %v2639_v2 = vmax.f32 %v2602_v31, 0.0 }
 0x197   :  { %6106 = vmatmul.mubr.msk.f32.gmra.mrb[24].mxu0 %vm445_vm3, %v2234_v32 }
 0x198   :  { %6108 = vmatprep.mubr.msk.f32.mxu0 %vm445_vm3, %v2235_v33 }
 0x199   :  { %v6137_v36 = vpop.f32.mrb[92].mxu1 }
 0x19a   :  { %v2615_v37 = vpop.f32.mrb[93].mxu1  ;;  %v2644_v12 = vmax.f32 %v6137_v36, 0.0 }
 0x19b   :  { %6109 = vmatmul.mubr.msk.f32.gmra.mrb[26].mxu0 %vm445_vm3, %v2236_v35  ;;  %v7372_v38 = vpop.f32.mrb[94].mxu1  ;;  %v2642_v5 = vmax.f32 %v2615_v37, 0.0 }
 0x19c   :  { %6111 = vmatprep.mubr.msk.f32.mxu0 %vm445_vm3, %v2237_v34  ;;  %v2618_v39 = vpop.f32.mrb[95].mxu1  ;;  %v2645_v10 = vmax.f32 %v7372_v38, 0.0 }
 0x19d   :  { %v2643_v11 = vmax.f32 %v2618_v39, 0.0 }
 0x19f   :  { %6112 = vmatmul.mubr.msk.f32.gmra.mrb[28].mxu0 %vm445_vm3, %v2238_v40 }
 0x1a0   :  { %6114 = vmatprep.mubr.msk.f32.mxu0 %vm445_vm3, %v2239_v41 }
 0x1a1   :  { %v7381_v44 = vpop.f32.mrb[96].mxu1 }
 0x1a2   :  { %v2972_v45 = vpop.f32.mrb[97].mxu1  ;;  %v3037_v15 = vmax.f32 %v7381_v44, 0.0 }
 0x1a3   :  { %6115 = vmatmul.mubr.msk.f32.gmra.mrb[30].mxu0 %vm445_vm3, %v2240_v43  ;;  %v7384_v46 = vpop.f32.mrb[98].mxu1  ;;  %v3035_v13 = vmax.f32 %v2972_v45, 0.0 }
 0x1a4   :  { %6141 = vmatprep.mubr.msk.f32.mxu0 %vm445_vm3, %v2630_v42  ;;  %v2975_v47 = vpop.f32.mrb[99].mxu1  ;;  %v3038_v21 = vmax.f32 %v7384_v46, 0.0 }
 0x1a5   :  { %v3036_v19 = vmax.f32 %v2975_v47, 0.0 }
 0x1a7   :  { %6142 = vmatmul.mubr.msk.f32.vlgmr.msra.gmra.mrb[16].mxu0 %vm445_vm3, %v2631_v48 }
 0x1a8   :  { %6188 = vmatpush3.msra.mxu0 %v5399_v18  ;;  %6144 = vmatprep.mubr.msk.f32.mxu0 %vm445_vm3, %v2632_v49 }
 0x1a9   :  { %v6177_v53 = vpop.f32.mrb[100].mxu1  ;;  %6235 = vmatprep.subr.mxu0 %v5448_v50 }
 0x1aa   :  { %v2988_v54 = vpop.f32.mrb[101].mxu1  ;;  %v3041_v27 = vmax.f32 %v6177_v53, 0.0 }
 0x1ab   :  { %6145 = vmatmul.mubr.msk.f32.gmra.mrb[18].mxu0 %vm445_vm3, %v2633_v52  ;;  %v6178_v55 = vpop.f32.mrb[102].mxu1  ;;  %v3039_v20 = vmax.f32 %v2988_v54, 0.0 }
 0x1ac   :  { %6147 = vmatprep.mubr.msk.f32.mxu0 %vm445_vm3, %v2634_v51  ;;  %v2991_v56 = vpop.f32.mrb[103].mxu1  ;;  %v3042_v29 = vmax.f32 %v6178_v55, 0.0 }
 0x1ad   :  { %v3040_v26 = vmax.f32 %v2991_v56, 0.0 }
 0x1af   :  { %6148 = vmatmul.mubr.msk.f32.gmra.mrb[20].mxu0 %vm445_vm3, %v2635_v57 }
 0x1b0   :  { %6150 = vmatprep.mubr.msk.f32.mxu0 %vm445_vm3, %v2636_v58 }
 0x1b1   :  { %v6181_v61 = vpop.f32.mrb[104].mxu1 }
 0x1b2   :  { %v3004_v62 = vpop.f32.mrb[105].mxu1  ;;  %v3045_v35 = vmax.f32 %v6181_v61, 0.0  ;;  %v6690_v61 = vmov 0.0  }
 0x1b3   :  { %6151 = vmatmul.mubr.msk.f32.gmra.mrb[22].mxu0 %vm445_vm3, %v2637_v60  ;;  %v6182_v63 = vpop.f32.mrb[106].mxu1  ;;  %v3043_v28 = vmax.f32 %v3004_v62, 0.0  ;;  %6265 = vmatprep.mubr.msk.f32.mxu1 %vm6689_vm4, %v6690_v61  ;;  %v7454_v62 = vld [vmem:[%s7690_s3] ss:$0 sm:$0xff] }
 0x1b4   :  { %6153 = vmatprep.mubr.msk.f32.mxu0 %vm445_vm3, %v2638_v59  ;;  %v3007_v1 = vpop.f32.mrb[107].mxu1  ;;  %v3046_v37 = vmax.f32 %v6182_v63, 0.0  ;;  %v3706_v63 = vld [vmem:[%s7689_s4] sm:$0xff] }
 0x1b5   :  { %v3044_v34 = vmax.f32 %v3007_v1, 0.0  ;;  %v3707_v1 = vld [vmem:[%s7689_s4 + $0x8] sm:$0xff] }
 0x1b7   :  { %6154 = vmatmul.mubr.msk.f32.gmra.mrb[24].mxu0 %vm445_vm3, %v2639_v2 }
 0x1b8   :  { %6156 = vmatprep.mubr.msk.f32.mxu0 %vm445_vm3, %v2640_v4 }
 0x1b9   :  { %v6185_v8 = vpop.f32.mrb[108].mxu1 }
 0x1ba   :  { %v3020_v0 = vpop.f32.mrb[109].mxu1  ;;  %v3049_v43 = vmax.f32 %v6185_v8, 0.0 }
 0x1bb   :  { %6157 = vmatmul.mubr.msk.f32.gmra.mrb[26].mxu0 %vm445_vm3, %v2641_v6  ;;  %v6186_v3 = vpop.f32.mrb[110].mxu1  ;;  %v3047_v36 = vmax.f32 %v3020_v0, 0.0  ;;  %v6412_v6 = vpack.c.bf16 %v3707_v1, %v3706_v63  ;;  %v5494_v1 = vld [vmem:[%s7689_s4 + $0xa0] sm:$0xff] }
 0x1bc   :  { %6159 = vmatprep.mubr.msk.f32.mxu0 %vm445_vm3, %v2642_v5  ;;  %v3023_v9 = vpop.f32.mrb[111].mxu1  ;;  %v3050_v45 = vmax.f32 %v6186_v3, 0.0  ;;  %v5470_v3 = vld [vmem:[%s7689_s4 + $0x20] sm:$0xff] }
 0x1bd   :  { %v3048_v42 = vmax.f32 %v3023_v9, 0.0  ;;  %v5471_v9 = vld [vmem:[%s7689_s4 + $0x28] sm:$0xff] }
 0x1bf   :  { %6160 = vmatmul.mubr.msk.f32.gmra.mrb[28].mxu0 %vm445_vm3, %v2643_v11 }
 0x1c0   :  { %6162 = vmatprep.mubr.msk.f32.mxu0 %vm445_vm3, %v2644_v12 }
 0x1c1   :  { %v6221_v14 = vpop.f32.mrb[112].mxu1 }
 0x1c2   :  { %v3377_v16 = vpop.f32.mrb[113].mxu1  ;;  %v3442_v47 = vmax.f32 %v6221_v14, 0.0 }
 0x1c3   :  { %6163 = vmatmul.mubr.msk.f32.gmra.mrb[30].mxu0 %vm445_vm3, %v2645_v10  ;;  %v6222_v17 = vpop.f32.mrb[114].mxu1  ;;  %v3440_v44 = vmax.f32 %v3377_v16, 0.0  ;;  %v5473_v16 = vld [vmem:[%s7689_s4 + $0x30] sm:$0xff] }
 0x1c4   :  { %6189 = vmatprep.mubr.msk.f32.mxu0 %vm445_vm3, %v3035_v13  ;;  %v3380_v18 = vpop.f32.mrb[115].mxu1  ;;  %v3443_v49 = vmax.f32 %v6222_v17, 0.0  ;;  %v6415_v13 = vpack.c.bf16 %v5471_v9, %v5470_v3  ;;  %v5474_v17 = vld [vmem:[%s7689_s4 + $0x38] sm:$0xff] }
 0x1c5   :  { %v3441_v46 = vmax.f32 %v3380_v18, 0.0 }
 0x1c7   :  { %6190 = vmatmul.mubr.msk.f32.vlgmr.msra.gmra.mrb[16].mxu0 %vm445_vm3, %v3036_v19 }
 0x1c8   :  { %6236 = vmatpush3.msra.mxu0 %v5448_v50  ;;  %6192 = vmatprep.mubr.msk.f32.mxu0 %vm445_vm3, %v3037_v15  ;;  %v6418_v15 = vpack.c.bf16 %v5474_v17, %v5473_v16  ;;  %v5503_v17 = vld [vmem:[%s7689_s4 + $0xd0] sm:$0xff] }
 0x1c9   :  { %v6225_v22 = vpop.f32.mrb[116].mxu1  ;;  %6456 = vmatprep.subr.bf16.mxu0 %v6688_v7 }
 0x1ca   :  { %v3393_v23 = vpop.f32.mrb[117].mxu1  ;;  %v3446_v51 = vmax.f32 %v6225_v22, 0.0  ;;  %v5476_v22 = vld [vmem:[%s7689_s4 + $0x40] sm:$0xff] }
 0x1cb   :  { %6193 = vmatmul.mubr.msk.f32.gmra.mrb[18].mxu0 %vm445_vm3, %v3038_v21  ;;  %v6226_v25 = vpop.f32.mrb[118].mxu1  ;;  %v3444_v48 = vmax.f32 %v3393_v23, 0.0  ;;  %v5477_v23 = vld [vmem:[%s7689_s4 + $0x48] sm:$0xff] }
 0x1cc   :  { %6195 = vmatprep.mubr.msk.f32.mxu0 %vm445_vm3, %v3039_v20  ;;  %v3396_v24 = vpop.f32.mrb[119].mxu1  ;;  %v3447_v52 = vmax.f32 %v6226_v25, 0.0 }
 0x1cd   :  { %v3445_v50 = vmax.f32 %v3396_v24, 0.0 }
 0x1cf   :  { %6196 = vmatmul.mubr.msk.f32.gmra.mrb[20].mxu0 %vm445_vm3, %v3040_v26  ;;  %v6421_v26 = vpack.c.bf16 %v5477_v23, %v5476_v22  ;;  %v5507_v22 = vld [vmem:[%s7689_s4 + $0xe8] sm:$0xff] }
 0x1d0   :  { %6198 = vmatprep.mubr.msk.f32.mxu0 %vm445_vm3, %v3041_v27 }
 0x1d1   :  { %v6229_v30 = vpop.f32.mrb[120].mxu1 }
 0x1d2   :  { %v3409_v31 = vpop.f32.mrb[121].mxu1  ;;  %v3450_v55 = vmax.f32 %v6229_v30, 0.0  ;;  %v5480_v30 = vld [vmem:[%s7689_s4 + $0x58] sm:$0xff] }
 0x1d3   :  { %6199 = vmatmul.mubr.msk.f32.gmra.mrb[22].mxu0 %vm445_vm3, %v3042_v29  ;;  %v6230_v32 = vpop.f32.mrb[122].mxu1  ;;  %v3448_v53 = vmax.f32 %v3409_v31, 0.0  ;;  %v5479_v29 = vld [vmem:[%s7689_s4 + $0x50] sm:$0xff] }
 0x1d4   :  { %6201 = vmatprep.mubr.msk.f32.mxu0 %vm445_vm3, %v3043_v28  ;;  %v3412_v33 = vpop.f32.mrb[123].mxu1  ;;  %v3451_v56 = vmax.f32 %v6230_v32, 0.0 }
 0x1d5   :  { %v3449_v54 = vmax.f32 %v3412_v33, 0.0  ;;  %v6424_v33 = vpack.c.bf16 %v5480_v30, %v5479_v29 }
 0x1d7   :  { %6202 = vmatmul.mubr.msk.f32.gmra.mrb[24].mxu0 %vm445_vm3, %v3044_v34 }
 0x1d8   :  { %6204 = vmatprep.mubr.msk.f32.mxu0 %vm445_vm3, %v3045_v35 }
 0x1d9   :  { %v6233_v38 = vpop.f32.mrb[124].mxu1 }
 0x1da   :  { %v3425_v39 = vpop.f32.mrb[125].mxu1  ;;  %v3454_v59 = vmax.f32 %v6233_v38, 0.0 }
 0x1db   :  { %6205 = vmatmul.mubr.msk.f32.gmra.mrb[26].mxu0 %vm445_vm3, %v3046_v37  ;;  %v6234_v40 = vpop.f32.mrb[126].mxu1  ;;  %v3452_v57 = vmax.f32 %v3425_v39, 0.0  ;;  %v5483_v37 = vld [vmem:[%s7689_s4 + $0x68] sm:$0xff] }
 0x1dc   :  { %6207 = vmatprep.mubr.msk.f32.mxu0 %vm445_vm3, %v3047_v36  ;;  %v3428_v41 = vpop.f32.mrb[127].mxu1  ;;  %v3455_v60 = vmax.f32 %v6234_v40, 0.0  ;;  %v5482_v36 = vld [vmem:[%s7689_s4 + $0x60] sm:$0xff] }
 0x1dd   :  { %v3453_v58 = vmax.f32 %v3428_v41, 0.0  ;;  %v6427_v40 = vpack.c.bf16 %v5483_v37, %v5482_v36  ;;  %v4947_v36 = vld [vmem:[%s7691_s5 + $0x20] sm:$0xff]  ;;  %v4948_v37 = vld [vmem:[%s7691_s5 + $0x28] sm:$0xff] }
 0x1df   :  { %6208 = vmatmul.mubr.msk.f32.gmra.mrb[28].mxu0 %vm445_vm3, %v3048_v42 }
 0x1e0   :  { %6210 = vmatprep.mubr.msk.f32.mxu0 %vm445_vm3, %v3049_v43  ;;  %v5485_v43 = vld [vmem:[%s7689_s4 + $0x70] sm:$0xff] }
 0x1e3   :  { %6211 = vmatmul.mubr.msk.f32.gmra.mrb[30].mxu0 %vm445_vm3, %v3050_v45 }
 0x1e4   :  { %6237 = vmatprep.mubr.msk.f32.mxu0 %vm445_vm3, %v3440_v44  ;;  %v5486_v44 = vld [vmem:[%s7689_s4 + $0x78] sm:$0xff] }
 0x1e7   :  { %6238 = vmatmul.mubr.msk.f32.vlgmr.msra.gmra.mrb[16].mxu0 %vm445_vm3, %v3441_v46 }
 0x1e8   :  { %6240 = vmatprep.mubr.msk.f32.mxu0 %vm445_vm3, %v3442_v47  ;;  %v6430_v47 = vpack.c.bf16 %v5486_v44, %v5485_v43  ;;  %v4952_v43 = vld [vmem:[%s7691_s5 + $0x48] sm:$0xff] }
 0x1eb   :  { %6241 = vmatmul.mubr.msk.f32.gmra.mrb[18].mxu0 %vm445_vm3, %v3443_v49 }
 0x1ec   :  { %6243 = vmatprep.mubr.msk.f32.mxu0 %vm445_vm3, %v3444_v48 }
 0x1ef   :  { %6244 = vmatmul.mubr.msk.f32.gmra.mrb[20].mxu0 %vm445_vm3, %v3445_v50  ;;  %v5488_v50 = vld [vmem:[%s7689_s4 + $0x80] sm:$0xff] }
 0x1f0   :  { %6246 = vmatprep.mubr.msk.f32.mxu0 %vm445_vm3, %v3446_v51  ;;  %v5489_v51 = vld [vmem:[%s7689_s4 + $0x88] sm:$0xff] }
 0x1f3   :  { %6247 = vmatmul.mubr.msk.f32.gmra.mrb[22].mxu0 %vm445_vm3, %v3447_v52 }
 0x1f4   :  { %6249 = vmatprep.mubr.msk.f32.mxu0 %vm445_vm3, %v3448_v53 }
 0x1f7   :  { %6250 = vmatmul.mubr.msk.f32.gmra.mrb[24].mxu0 %vm445_vm3, %v3449_v54  ;;  %v6433_v54 = vpack.c.bf16 %v5489_v51, %v5488_v50  ;;  %v4937_v51 = vlaneseq }
 0x1f8   :  { %6252 = vmatprep.mubr.msk.f32.mxu0 %vm445_vm3, %v3450_v55 }
 0x1fb   :  { %6253 = vmatmul.mubr.msk.f32.gmra.mrb[26].mxu0 %vm445_vm3, %v3451_v56 }
 0x1fc   :  { %6255 = vmatprep.mubr.msk.f32.mxu0 %vm445_vm3, %v3452_v57  ;;  %v5491_v57 = vld [vmem:[%s7689_s4 + $0x90] sm:$0xff] }
 0x1ff   :  { %6256 = vmatmul.mubr.msk.f32.gmra.mrb[28].mxu0 %vm445_vm3, %v3453_v58  ;;  %v5492_v58 = vld [vmem:[%s7689_s4 + $0x98] sm:$0xff] }
 0x200   :  { %6258 = vmatprep.mubr.msk.f32.mxu0 %vm445_vm3, %v3454_v59  ;;  %v6436_v59 = vpack.c.bf16 %v5492_v58, %v5491_v57  ;;  %v4936_v57 = vld [vmem:[%s7692_s6] sm:$0x3] }
 0x203   :  { %6259 = vmatmul.mubr.msk.f32.gmra.mrb[30].mxu0 %vm445_vm3, %v3455_v60 }
 0x204   :  { %6405 = vmatprep.mubr.msk.f32.mxu0 %vm6689_vm4, %v6690_v61 }
 0x2ba   :  { %v6239_v2 = vpop.f32.mrb[16].mxu0 }
 0x2bb   :  { %v3675_v4 = vadd.f32 %v6239_v2, %v7454_v62  ;;  %v3572_v5 = vpop.f32.mrb[17].mxu0  ;;  %v5495_v2 = vld [vmem:[%s7689_s4 + $0xa8] sm:$0xff] }
 0x2bc   :  { %v3674_v0 = vadd.f32 %v7454_v62, %v3572_v5 }
 0x2bd   :  { %v3691_v8 = vmax.f32 %v3675_v4, 0.0  ;;  %v6439_v4 = vpack.c.bf16 %v5495_v2, %v5494_v1 }
 0x2be   :  { %v6242_v11 = vpop.f32.mrb[18].mxu0  ;;  %v3690_v10 = vmax.f32 %v3674_v0, 0.0  ;;  %v5498_v0 = vld [vmem:[%s7689_s4 + $0xb8] sm:$0xff] }
 0x2bf   :  { %v3582_v12 = vpop.f32.mrb[19].mxu0  ;;  %6266 = vmatmul.mubr.msk.f32.vlgmr.msra.gmra.mrb[128].mxu1 %vm3711_vm5, %v3691_v8  ;;  %v3677_v20 = vadd.f32 %v6242_v11, %v7454_v62  ;;  %v5497_v8 = vld [vmem:[%s7689_s4 + $0xb0] sm:$0xff] }
 0x2c0   :  { %6413 = vmatpush3.bf16.msra.mxu1 %v6412_v6  ;;  %6272 = vmatprep.mubr.msk.f32.mxu1 %vm6689_vm4, %v6690_v61  ;;  %v3676_v14 = vadd.f32 %v7454_v62, %v3582_v12  ;;  %v6442_v3 = vpack.c.bf16 %v5498_v0, %v5497_v8  ;;  %v5500_v12 = vld [vmem:[%s7689_s4 + $0xc0] sm:$0xff] }
 0x2c1   :  { %6414 = vmatprep.subr.bf16.mxu1 %v6688_v7  ;;  %v3693_v27 = vmax.f32 %v3677_v20, 0.0 }
 0x2c2   :  { %v6245_v18 = vpop.f32.mrb[20].mxu0  ;;  %v3692_v21 = vmax.f32 %v3676_v14, 0.0 }
 0x2c3   :  { %v3592_v19 = vpop.f32.mrb[21].mxu0  ;;  %6273 = vmatmul.mubr.msk.f32.vlgmr.msra.gmra.mrb[130].mxu1 %vm3711_vm5, %v3690_v10  ;;  %v3679_v34 = vadd.f32 %v6245_v18, %v7454_v62  ;;  %v5504_v18 = vld [vmem:[%s7689_s4 + $0xd8] sm:$0xff] }
 0x2c4   :  { %6416 = vmatpush3.bf16.msra.mxu1 %v6415_v13  ;;  %6279 = vmatprep.mubr.msk.f32.mxu1 %vm6689_vm4, %v6690_v61  ;;  %v3678_v28 = vadd.f32 %v7454_v62, %v3592_v19  ;;  %v5501_v13 = vld [vmem:[%s7689_s4 + $0xc8] sm:$0xff]  ;;  %v6448_v19 = vpack.c.bf16 %v5504_v18, %v5503_v17 }
 0x2c5   :  { %6417 = vmatprep.subr.bf16.mxu1 %v6688_v7  ;;  %v3695_v41 = vmax.f32 %v3679_v34, 0.0  ;;  %v6445_v10 = vpack.c.bf16 %v5501_v13, %v5500_v12  ;;  %v4945_v34 = vld [vmem:[%s7691_s5 + $0x10] sm:$0xff] }
 0x2c6   :  { %v6248_v25 = vpop.f32.mrb[22].mxu0  ;;  %v3694_v35 = vmax.f32 %v3678_v28, 0.0 }
 0x2c7   :  { %v3602_v24 = vpop.f32.mrb[23].mxu0  ;;  %6280 = vmatmul.mubr.msk.f32.vlgmr.msra.gmra.mrb[132].mxu1 %vm3711_vm5, %v3692_v21  ;;  %v3681_v48 = vadd.f32 %v6248_v25, %v7454_v62  ;;  %v5506_v21 = vld [vmem:[%s7689_s4 + $0xe0] sm:$0xff] }
 0x2c8   :  { %6419 = vmatpush3.bf16.msra.mxu1 %v6418_v15  ;;  %6286 = vmatprep.mubr.msk.f32.mxu1 %vm6689_vm4, %v6690_v61  ;;  %v3680_v42 = vadd.f32 %v7454_v62, %v3602_v24  ;;  %v6451_v23 = vpack.c.bf16 %v5507_v22, %v5506_v21 }
 0x2c9   :  { %6420 = vmatprep.subr.bf16.mxu1 %v6688_v7  ;;  %v3697_v55 = vmax.f32 %v3681_v48, 0.0  ;;  %v4955_v48 = vld [vmem:[%s7691_s5 + $0x60] sm:$0xff] }
 0x2ca   :  { %v6251_v31 = vpop.f32.mrb[24].mxu0  ;;  %v3696_v49 = vmax.f32 %v3680_v42, 0.0  ;;  %v4951_v42 = vld [vmem:[%s7691_s5 + $0x40] sm:$0xff] }
 0x2cb   :  { %v3612_v32 = vpop.f32.mrb[25].mxu0  ;;  %6287 = vmatmul.mubr.msk.f32.vlgmr.msra.gmra.mrb[134].mxu1 %vm3711_vm5, %v3693_v27  ;;  %v3683_v60 = vadd.f32 %v6251_v31, %v7454_v62  ;;  %v5510_v27 = vld [vmem:[%s7689_s4 + $0xf8] sm:$0xff]  ;;  %v6469_v44 = vpack.c.bf16 %v4952_v43, %v4951_v42 }
 0x2cc   :  { %6422 = vmatpush3.bf16.msra.mxu1 %v6421_v26  ;;  %6293 = vmatprep.mubr.msk.f32.mxu1 %vm6689_vm4, %v6690_v61  ;;  %v3682_v56 = vadd.f32 %v7454_v62, %v3612_v32  ;;  %v5509_v26 = vld [vmem:[%s7689_s4 + $0xf0] sm:$0xff]  ;;  %v4943_v32 = vld [vmem:[%s7691_s5] sm:$0xff] }
 0x2cd   :  { %6423 = vmatprep.subr.bf16.mxu1 %v6688_v7  ;;  %v3699_v5 = vmax.f32 %v3683_v60, 0.0  ;;  %v6454_v28 = vpack.c.bf16 %v5510_v27, %v5509_v26 }
 0x2ce   :  { %v6254_v38 = vpop.f32.mrb[26].mxu0  ;;  %v3698_v63 = vmax.f32 %v3682_v56, 0.0 }
 0x2cf   :  { %v3622_v39 = vpop.f32.mrb[27].mxu0  ;;  %6294 = vmatmul.mubr.msk.f32.vlgmr.msra.gmra.mrb[136].mxu1 %vm3711_vm5, %v3694_v35  ;;  %v3685_v9 = vadd.f32 %v6254_v38, %v7454_v62  ;;  %v6463_v38 = vpack.c.bf16 %v4948_v37, %v4947_v36 }
 0x2d0   :  { %6425 = vmatpush3.bf16.msra.mxu1 %v6424_v33  ;;  %6300 = vmatprep.mubr.msk.f32.mxu1 %vm6689_vm4, %v6690_v61  ;;  %v3684_v6 = vadd.f32 %v7454_v62, %v3622_v39  ;;  %v4949_v39 = vld [vmem:[%s7691_s5 + $0x30] sm:$0xff] }
 0x2d1   :  { %6426 = vmatprep.subr.bf16.mxu1 %v6688_v7  ;;  %v3701_v14 = vmax.f32 %v3685_v9, 0.0 }
 0x2d2   :  { %v6257_v45 = vpop.f32.mrb[28].mxu0  ;;  %v3700_v11 = vmax.f32 %v3684_v6, 0.0 }
 0x2d3   :  { %v3632_v46 = vpop.f32.mrb[29].mxu0  ;;  %6301 = vmatmul.mubr.msk.f32.vlgmr.msra.gmra.mrb[138].mxu1 %vm3711_vm5, %v3695_v41  ;;  %v3687_v15 = vadd.f32 %v6257_v45, %v7454_v62  ;;  %v4953_v45 = vld [vmem:[%s7691_s5 + $0x50] sm:$0xff] }
 0x2d4   :  { %6428 = vmatpush3.bf16.msra.mxu1 %v6427_v40  ;;  %6307 = vmatprep.mubr.msk.f32.mxu1 %vm6689_vm4, %v6690_v61  ;;  %v3686_v16 = vadd.f32 %v7454_v62, %v3632_v46  ;;  %v4950_v40 = vld [vmem:[%s7691_s5 + $0x38] sm:$0xff] }
 0x2d5   :  { %6429 = vmatprep.subr.bf16.mxu1 %v6688_v7  ;;  %v3703_v25 = vmax.f32 %v3687_v15, 0.0  ;;  %v6466_v41 = vpack.c.bf16 %v4950_v40, %v4949_v39  ;;  %v4954_v46 = vld [vmem:[%s7691_s5 + $0x58] sm:$0xff] }
 0x2d6   :  { %v7536_v52 = vpop.f32.mrb[30].mxu0  ;;  %v3702_v20 = vmax.f32 %v3686_v16, 0.0 }
 0x2d7   :  { %v3642_v53 = vpop.f32.mrb[31].mxu0  ;;  %6308 = vmatmul.mubr.msk.f32.vlgmr.msra.gmra.mrb[140].mxu1 %vm3711_vm5, %v3696_v49  ;;  %v3689_v29 = vadd.f32 %v7536_v52, %v7454_v62  ;;  %v4956_v49 = vld [vmem:[%s7691_s5 + $0x68] sm:$0xff]  ;;  %v4957_v52 = vld [vmem:[%s7691_s5 + $0x70] sm:$0xff] }
 0x2d8   :  { %6431 = vmatpush3.bf16.msra.mxu1 %v6430_v47  ;;  %6314 = vmatprep.mubr.msk.f32.mxu1 %vm6689_vm4, %v6690_v61  ;;  %v3688_v24 = vadd.f32 %v7454_v62, %v3642_v53  ;;  %v4944_v62 = vld [vmem:[%s7691_s5 + $0x8] sm:$0xff]  ;;  %v6472_v47 = vpack.c.bf16 %v4954_v46, %v4953_v45  ;;  %v6475_v50 = vpack.c.bf16 %v4956_v49, %v4955_v48  ;;  %v4958_v53 = vld [vmem:[%s7691_s5 + $0x78] sm:$0xff] }
 0x2d9   :  { %6432 = vmatprep.subr.bf16.mxu1 %v6688_v7  ;;  %v3705_v31 = vmax.f32 %v3689_v29, 0.0  ;;  %v6457_v33 = vpack.c.bf16 %v4944_v62, %v4943_v32 }
 0x2da   :  { %v3704_v30 = vmax.f32 %v3688_v24, 0.0 }
 0x2db   :  { %6315 = vmatmul.mubr.msk.f32.vlgmr.msra.gmra.mrb[142].mxu1 %vm3711_vm5, %v3697_v55  ;;  %6458 = vmatpush3.bf16.msra.mxu0 %v6457_v33  ;;  %v4938_v55 = vshrl.u32 %v4937_v51, 7 }
 0x2dc   :  { %6434 = vmatpush3.bf16.msra.mxu1 %v6433_v54  ;;  %6321 = vmatprep.mubr.msk.f32.mxu1 %vm6689_vm4, %v6690_v61  ;;  %v6478_v54 = vpack.c.bf16 %v4958_v53, %v4957_v52 }
 0x2dd   :  { %6435 = vmatprep.subr.bf16.mxu1 %v6688_v7  ;;  %6459 = vmatprep.subr.bf16.mxu0 %v6688_v7  ;;  %v4961_v56 = vsub.s32 1, %v4938_v55  ;;  %v4939_v36 = vsub.s32 0, %v4938_v55 }
 0x2df   :  { %6322 = vmatmul.mubr.msk.f32.vlgmr.msra.gmra.mrb[144].mxu1 %vm3711_vm5, %v3698_v63  ;;  %v4962_v58 = vrot.slane %v4936_v57, %v4961_v56  ;;  %v4940_v40 = vrot.slane %v4936_v57, %v4939_v36 }
 0x2e0   :  { %6437 = vmatpush3.bf16.msra.mxu1 %v6436_v59  ;;  %6328 = vmatprep.mubr.msk.f32.mxu1 %vm6689_vm4, %v6690_v61 }
 0x2e1   :  { %6438 = vmatprep.subr.bf16.mxu1 %v6688_v7 }
 0x2e3   :  { %6329 = vmatmul.mubr.msk.f32.vlgmr.msra.gmra.mrb[146].mxu1 %vm3711_vm5, %v3699_v5 }
 0x2e4   :  { %6440 = vmatpush3.bf16.msra.mxu1 %v6439_v4  ;;  %6335 = vmatprep.mubr.msk.f32.mxu1 %vm6689_vm4, %v6690_v61 }
 0x2e5   :  { %6441 = vmatprep.subr.bf16.mxu1 %v6688_v7 }
 0x2e7   :  { %6336 = vmatmul.mubr.msk.f32.vlgmr.msra.gmra.mrb[148].mxu1 %vm3711_vm5, %v3700_v11 }
 0x2e8   :  { %6443 = vmatpush3.bf16.msra.mxu1 %v6442_v3  ;;  %6342 = vmatprep.mubr.msk.f32.mxu1 %vm6689_vm4, %v6690_v61 }
 0x2e9   :  { %6444 = vmatprep.subr.bf16.mxu1 %v6688_v7 }
 0x2eb   :  { %6343 = vmatmul.mubr.msk.f32.vlgmr.msra.gmra.mrb[150].mxu1 %vm3711_vm5, %v3701_v14 }
 0x2ec   :  { %6446 = vmatpush3.bf16.msra.mxu1 %v6445_v10  ;;  %6349 = vmatprep.mubr.msk.f32.mxu1 %vm6689_vm4, %v6690_v61 }
 0x2ed   :  { %6447 = vmatprep.subr.bf16.mxu1 %v6688_v7 }
 0x2ef   :  { %6350 = vmatmul.mubr.msk.f32.vlgmr.msra.gmra.mrb[152].mxu1 %vm3711_vm5, %v3702_v20 }
 0x2f0   :  { %6449 = vmatpush3.bf16.msra.mxu1 %v6448_v19  ;;  %6356 = vmatprep.mubr.msk.f32.mxu1 %vm6689_vm4, %v6690_v61 }
 0x2f1   :  { %6450 = vmatprep.subr.bf16.mxu1 %v6688_v7 }
 0x2f3   :  { %6357 = vmatmul.mubr.msk.f32.vlgmr.msra.gmra.mrb[154].mxu1 %vm3711_vm5, %v3703_v25 }
 0x2f4   :  { %6452 = vmatpush3.bf16.msra.mxu1 %v6451_v23  ;;  %6363 = vmatprep.mubr.msk.f32.mxu1 %vm6689_vm4, %v6690_v61 }
 0x2f5   :  { %6453 = vmatprep.subr.bf16.mxu1 %v6688_v7 }
 0x2f7   :  { %6364 = vmatmul.mubr.msk.f32.vlgmr.msra.gmra.mrb[156].mxu1 %vm3711_vm5, %v3704_v30 }
 0x2f8   :  { %6455 = vmatpush3.bf16.msra.mxu1 %v6454_v28  ;;  %6370 = vmatprep.mubr.msk.f32.mxu1 %vm6689_vm4, %v6690_v61  ;;  %v4946_v61 = vld [vmem:[%s7691_s5 + $0x18] sm:$0xff] }
 0x2f9   :  { %v6460_v35 = vpack.c.bf16 %v4946_v61, %v4945_v34 }
 0x2fb   :  { %6371 = vmatmul.mubr.msk.f32.vlgmr.msra.gmra.mrb[158].mxu1 %vm3711_vm5, %v3705_v31  ;;  %6461 = vmatpush3.bf16.msra.mxu0 %v6460_v35 }
 0x2fc   :  { %6462 = vmatprep.subr.bf16.mxu0 %v6688_v7 }
 0x2ff   :  { %6464 = vmatpush3.bf16.msra.mxu0 %v6463_v38 }
 0x300   :  { %6465 = vmatprep.subr.bf16.mxu0 %v6688_v7 }
 0x303   :  { %6467 = vmatpush3.bf16.msra.mxu0 %v6466_v41 }
 0x304   :  { %6468 = vmatprep.subr.bf16.mxu0 %v6688_v7 }
 0x307   :  { %6470 = vmatpush3.bf16.msra.mxu0 %v6469_v44 }
 0x308   :  { %6471 = vmatprep.subr.bf16.mxu0 %v6688_v7 }
 0x30b   :  { %6473 = vmatpush3.bf16.msra.mxu0 %v6472_v47 }
 0x30c   :  { %6474 = vmatprep.subr.bf16.mxu0 %v6688_v7 }
 0x30f   :  { %6476 = vmatpush3.bf16.msra.mxu0 %v6475_v50 }
 0x310   :  { %6477 = vmatprep.subr.bf16.mxu0 %v6688_v7 }
 0x313   :  { %6479 = vmatpush3.bf16.msra.mxu0 %v6478_v54 }
 0x392   :  { %v3781_v59 = vpop.f32.mrb[128].mxu1 }
 0x393   :  { %v6267_v60 = vpop.f32.mrb[129].mxu1 }
 0x396   :  { %v3854_v7 = vpop.f32.mrb[130].mxu1 }
 0x397   :  { %v3855_v63 = vadd.f32 %v3854_v7, %v3781_v59  ;;  %v6274_v1 = vpop.f32.mrb[131].mxu1 }
 0x39a   :  { %v3930_v2 = vpop.f32.mrb[132].mxu1 }
 0x39b   :  { %v3934_v4 = vadd.f32 %v3930_v2, %v3855_v63  ;;  %v6281_v5 = vpop.f32.mrb[133].mxu1 }
 0x39e   :  { %v4007_v6 = vpop.f32.mrb[134].mxu1 }
 0x39f   :  { %v4011_v8 = vadd.f32 %v4007_v6, %v3934_v4  ;;  %v6288_v0 = vpop.f32.mrb[135].mxu1 }
 0x3a2   :  { %v4084_v3 = vpop.f32.mrb[136].mxu1 }
 0x3a3   :  { %v4088_v9 = vadd.f32 %v4084_v3, %v4011_v8  ;;  %v6295_v11 = vpop.f32.mrb[137].mxu1 }
 0x3a6   :  { %v4161_v12 = vpop.f32.mrb[138].mxu1 }
 0x3a7   :  { %v4165_v13 = vadd.f32 %v4161_v12, %v4088_v9  ;;  %v6302_v10 = vpop.f32.mrb[139].mxu1 }
 0x3aa   :  { %v4238_v14 = vpop.f32.mrb[140].mxu1 }
 0x3ab   :  { %v4242_v16 = vadd.f32 %v4238_v14, %v4165_v13  ;;  %v6309_v17 = vpop.f32.mrb[141].mxu1 }
 0x3ae   :  { %v4315_v18 = vpop.f32.mrb[142].mxu1 }
 0x3af   :  { %v4319_v19 = vadd.f32 %v4315_v18, %v4242_v16  ;;  %v6316_v15 = vpop.f32.mrb[143].mxu1 }
 0x3b2   :  { %v4392_v20 = vpop.f32.mrb[144].mxu1 }
 0x3b3   :  { %v4396_v21 = vadd.f32 %v4392_v20, %v4319_v19  ;;  %v6323_v22 = vpop.f32.mrb[145].mxu1 }
 0x3b6   :  { %v4469_v23 = vpop.f32.mrb[146].mxu1 }
 0x3b7   :  { %v4473_v25 = vadd.f32 %v4469_v23, %v4396_v21  ;;  %v6330_v24 = vpop.f32.mrb[147].mxu1 }
 0x3ba   :  { %v4546_v26 = vpop.f32.mrb[148].mxu1 }
 0x3bb   :  { %v4550_v27 = vadd.f32 %v4546_v26, %v4473_v25  ;;  %v6337_v28 = vpop.f32.mrb[149].mxu1 }
 0x3be   :  { %v4623_v29 = vpop.f32.mrb[150].mxu1 }
 0x3bf   :  { %v4627_v30 = vadd.f32 %v4623_v29, %v4550_v27  ;;  %v6344_v31 = vpop.f32.mrb[151].mxu1 }
 0x3c2   :  { %v4700_v32 = vpop.f32.mrb[152].mxu1 }
 0x3c3   :  { %v4704_v62 = vadd.f32 %v4700_v32, %v4627_v30  ;;  %v6351_v33 = vpop.f32.mrb[153].mxu1 }
 0x3c6   :  { %v4777_v34 = vpop.f32.mrb[154].mxu1 }
 0x3c7   :  { %v4781_v61 = vadd.f32 %v4777_v34, %v4704_v62  ;;  %v6358_v35 = vpop.f32.mrb[155].mxu1 }
 0x3ca   :  { %v4854_v37 = vpop.f32.mrb[156].mxu1 }
 0x3cb   :  { %v4858_v38 = vadd.f32 %v4854_v37, %v4781_v61  ;;  %v6365_v39 = vpop.f32.mrb[157].mxu1 }
 0x3ce   :  { %v4931_v41 = vpop.f32.mrb[158].mxu1 }
 0x3cf   :  { %v4935_v42 = vadd.f32 %v4931_v41, %v4858_v38  ;;  %v6372_v43 = vpop.f32.mrb[159].mxu1 }
 0x3d1   :  { %v4941_v44 = vadd.f32 %v4940_v40, %v4935_v42 }
 0x3d3   :  { %v4942_v45 = vmax.f32 %v4941_v44, 0.0 }
 0x3d5   :  { %6406 = vmatmul.mubr.f32.vlgmr.msra.gmra.mrb[32].mxu0 %v4942_v45 }
 0x4a8   :  { %v5029_v46 = vpop.f32.mrb[32].mxu0 }
 0x4a9   :  { %v5030_v47 = vadd.f32 %v5029_v46, %v4962_v58  ;;  %v6407_v48 = vpop.f32.mrb[33].mxu0 }
 0x4ab   :  { %5033 = vst [vmem:[%s7693_s7] sm:$0xff] %v5030_v47 }

</bundles_post_ra>
